<compile_context>
chip_gen: v7x
topology: tpu7x:2x2x1
jax: 0.10.0
libtpu: 0.0.40
codegen_flags: <defaults>
</compile_context>

<pallas_src>
import functools
import math

import jax
import jax.numpy as jnp
from jax.experimental import pallas as pl
from jax.experimental.pallas import tpu as pltpu


# ------------------------------ synthetic config ------------------------------
INPUT_DIM = 4                    # config.input_dim
OUTPUT_DIM = 4                   # config.output_dim (y dim)
DI_DIM = 32                      # config.data_interaction_dim == attention hidden dims
MLP_NUM_HIDDEN = 2               # config.data_interaction_mlp_num_hidden
SELF_ATTN_HEADS = 4              # config.data_interaction_self_attention_num_heads
CROSS_ATTN_HEADS = 4             # config.data_interaction_cross_attention_num_heads

_COMPILER_PARAMS = pltpu.CompilerParams(
    dimension_semantics=("parallel",),
    vmem_limit_bytes=32 * 1024 * 1024,   # safe on v5e/v6e (128 MiB) and v7x (64 MiB)
)


def _gelu_exact(x):
    # nn.GELU() default = exact erf-based GELU (kept exact for parity with torch).
    return 0.5 * x * (1.0 + jax.lax.erf(x * (1.0 / math.sqrt(2.0))))


def _replicated_spec(w):
    """Full-array block, same block for every grid step (1-D batch grid)."""
    n = w.ndim
    return pl.BlockSpec(w.shape, lambda b, _n=n: (0,) * _n)


# ------------------------------ in-kernel helpers ------------------------------
def _mlp2(h0, w1_ref, b1_ref, w2_ref, b2_ref):
    """GELU -> Linear -> GELU -> Linear (the tail shared by both MLPs)."""
    h = _gelu_exact(h0)
    h = jnp.dot(h, w1_ref[...], preferred_element_type=jnp.float32) + b1_ref[...]
    h = _gelu_exact(h)
    return jnp.dot(h, w2_ref[...], preferred_element_type=jnp.float32) + b2_ref[...]


def _attention_heads(q, k, v, wo3_ref, bo_ref, num_heads, scale):
    """Per-head scaled-dot attention + out-projection.

    q/k/v are already in-projected [L, E] values; wo3_ref is W_out split into per-head
    row blocks [nh, hd, E] so that sum_h(head_h @ Wo_h) == concat(heads) @ Wo.
    Rows (queries) are independent: no cross-row reduction other than the softmax
    over keys, so any garbage rows would stay confined to their own output rows.
    """
    lq, e = q.shape
    hd = e // num_heads
    acc = jnp.zeros((lq, e), jnp.float32)
    for h in range(num_heads):                      # static, unrolled (nh = 4)
        sl = slice(h * hd, (h + 1) * hd)
        qh = q[:, sl]
        kh = k[:, sl]
        vh = v[:, sl]
        s = jax.lax.dot_general(qh * scale, kh, (((1,), (1,)), ((), ())),
                                preferred_element_type=jnp.float32)     # [Lq, Lk]
        s = s - jnp.max(s, axis=-1, keepdims=True)
        p = jnp.exp(s)
        # Normalize via the EUP reciprocal (idle slot) instead of a VALU divide.
        p = p * pl.reciprocal(jnp.sum(p, axis=-1, keepdims=True), approx=True)
        oh = jnp.dot(p, vh, preferred_element_type=jnp.float32)          # [Lq, hd]
        acc = acc + jnp.dot(oh, wo3_ref[h], preferred_element_type=jnp.float32)
    return acc + bo_ref[...]


# ----------------------------- fully fused kernel ------------------------------
def encoder_kernel(
    # per-batch activations
    xc_ref, yc_ref, xt_ref,
    # xy_mlp (concat fused via split W0)
    xy_w0x_ref, xy_w0y_ref, xy_b0_ref, xy_w1_ref, xy_b1_ref, xy_w2_ref, xy_b2_ref,
    # x_mlp
    x_w0_ref, x_b0_ref, x_w1_ref, x_b1_ref, x_w2_ref, x_b2_ref,
    # self-attention (fused QKV in-projection)
    sa_wqkv_ref, sa_bqkv_ref, sa_wo3_ref, sa_bo_ref,
    # cross-attention
    ca_wq_ref, ca_bq_ref, ca_wk_ref, ca_bk_ref, ca_wv_ref, ca_bv_ref,
    ca_wo3_ref, ca_bo_ref,
    # output
    o_ref,
    *, sa_heads, ca_heads, sa_scale, ca_scale, e_dim):
    xc = xc_ref[0]          # [n_ctx, dx]
    yc = yc_ref[0]          # [n_ctx, dy]
    xt = xt_ref[0]          # [n_tgt, dx]

    # ---- xy_mlp with cat([x, y], -1) fused in (split-W0 matmul, no xy tensor) ----
    h0 = (jnp.dot(xc, xy_w0x_ref[...], preferred_element_type=jnp.float32)
          + jnp.dot(yc, xy_w0y_ref[...], preferred_element_type=jnp.float32)
          + xy_b0_ref[...])
    xy_enc = _mlp2(h0, xy_w1_ref, xy_b1_ref, xy_w2_ref, xy_b2_ref)       # [n_ctx, E]

    # ---- x_mlp on targets ----
    g0 = jnp.dot(xt, x_w0_ref[...], preferred_element_type=jnp.float32) + x_b0_ref[...]
    xt_enc = _mlp2(g0, x_w1_ref, x_b1_ref, x_w2_ref, x_b2_ref)           # [n_tgt, E]

    # ---- self-attention over the context (one lane-dense [E,3E] in-projection) ----
    qkv = (jnp.dot(xy_enc, sa_wqkv_ref[...], preferred_element_type=jnp.float32)
           + sa_bqkv_ref[...])                                           # [n_ctx, 3E]
    q_s = qkv[:, :e_dim]
    k_s = qkv[:, e_dim:2 * e_dim]
    v_s = qkv[:, 2 * e_dim:]
    rs = _attention_heads(q_s, k_s, v_s, sa_wo3_ref, sa_bo_ref, sa_heads, sa_scale)

    # ---- cross-attention: query = xt_enc, key = xy_enc, value = rs (all in VMEM) ----
    q_c = jnp.dot(xt_enc, ca_wq_ref[...], preferred_element_type=jnp.float32) + ca_bq_ref[...]
    k_c = jnp.dot(xy_enc, ca_wk_ref[...], preferred_element_type=jnp.float32) + ca_bk_ref[...]
    v_c = jnp.dot(rs, ca_wv_ref[...], preferred_element_type=jnp.float32) + ca_bv_ref[...]
    out = _attention_heads(q_c, k_c, v_c, ca_wo3_ref, ca_bo_ref, ca_heads, ca_scale)

    # ---- torch.mean(rs, dim=1, keepdim=True) fused in: only the mean leaves VMEM ----
    o_ref[0] = jnp.mean(out, axis=0, keepdims=True).astype(o_ref.dtype)


# -------------------------------- full forward ---------------------------------
@jax.jit
def data_interaction_encoder(x_context, y_context, x_target, params):
    assert MLP_NUM_HIDDEN == 2
    bs, n_ctx, dx = x_context.shape
    dy = y_context.shape[-1]
    n_tgt = x_target.shape[1]
    dtype = x_context.dtype
    e = DI_DIM

    # ---- xy_mlp weights, W0 split into x / y halves (concat fusion) ----
    xy_w0, xy_b0, xy_w1, xy_b1, xy_w2, xy_b2 = params["xy_mlp"]
    xy_w0x, xy_w0y = xy_w0[:dx], xy_w0[dx:]
    x_w0, x_b0, x_w1, x_b1, x_w2, x_b2 = params["x_mlp"]

    # ---- self-attention: fuse Wq/Wk/Wv into one [E, 3E] block; split Wo per head ----
    sa_wq, sa_bq, sa_wk, sa_bk, sa_wv, sa_bv, sa_wo, sa_bo = params["self_attn"]
    sa_hd = e // SELF_ATTN_HEADS
    sa_wqkv = jnp.concatenate([sa_wq, sa_wk, sa_wv], axis=1)             # [E, 3E]
    sa_bqkv = jnp.concatenate([sa_bq, sa_bk, sa_bv], axis=0).reshape(1, 3 * e)
    sa_wo3 = sa_wo.reshape(SELF_ATTN_HEADS, sa_hd, e)
    sa_bo2 = sa_bo.reshape(1, e)

    # ---- cross-attention: q/k/v sources differ, so keep full-width E->E projections ----
    ca_wq, ca_bq, ca_wk, ca_bk, ca_wv, ca_bv, ca_wo, ca_bo = params["cross_attn"]
    ca_hd = e // CROSS_ATTN_HEADS
    ca_wo3 = ca_wo.reshape(CROSS_ATTN_HEADS, ca_hd, e)

    weights = [
        xy_w0x, xy_w0y, xy_b0, xy_w1, xy_b1, xy_w2, xy_b2,
        x_w0, x_b0, x_w1, x_b1, x_w2, x_b2,
        sa_wqkv, sa_bqkv, sa_wo3, sa_bo2,
        ca_wq, ca_bq.reshape(1, e), ca_wk, ca_bk.reshape(1, e),
        ca_wv, ca_bv.reshape(1, e), ca_wo3, ca_bo.reshape(1, e),
    ]
    weight_specs = [_replicated_spec(w) for w in weights]

    act_specs = [
        pl.BlockSpec((1, n_ctx, dx), lambda b: (b, 0, 0)),
        pl.BlockSpec((1, n_ctx, dy), lambda b: (b, 0, 0)),
        pl.BlockSpec((1, n_tgt, dx), lambda b: (b, 0, 0)),
    ]

    kernel = functools.partial(
        encoder_kernel,
        sa_heads=SELF_ATTN_HEADS, ca_heads=CROSS_ATTN_HEADS,
        sa_scale=1.0 / math.sqrt(sa_hd), ca_scale=1.0 / math.sqrt(ca_hd),
        e_dim=e)

    # One fused kernel, grid over batch ("parallel": >=2 steps -> both v7x TCs busy).
    # TODO(synk): for very large bs, block several batch elements per grid step to
    # amortize the ~0.35us/step overhead further.
    return pl.pallas_call(
        kernel,
        out_shape=jax.ShapeDtypeStruct((bs, 1, e), dtype),
        grid_spec=pltpu.PrefetchScalarGridSpec(
            num_scalar_prefetch=0,
            grid=(bs,),
            in_specs=act_specs + weight_specs,
            out_specs=pl.BlockSpec((1, 1, e), lambda b: (b, 0, 0)),
        ),
        compiler_params=_COMPILER_PARAMS,
    )(x_context, y_context, x_target, *weights)     # [bs, 1, E]


# ------------------------- deterministic parameter init ------------------------
def init_params(key):
    def linear(k, fan_in, fan_out):
        kw, kb = jax.random.split(k)
        bound = 1.0 / math.sqrt(fan_in)
        w = jax.random.uniform(kw, (fan_in, fan_out), jnp.float32, -bound, bound)
        b = jax.random.uniform(kb, (1, fan_out), jnp.float32, -bound, bound)
        return w, b

    def mlp(k, d_in, hidden, d_out):
        k0, k1, k2 = jax.random.split(k, 3)
        w0, b0 = linear(k0, d_in, hidden)
        w1, b1 = linear(k1, hidden, hidden)
        w2, b2 = linear(k2, hidden, d_out)
        return (w0, b0, w1, b1, w2, b2)

    def mha(k, e):
        ks = jax.random.split(k, 4)
        bound = 1.0 / math.sqrt(e)

        def proj(kk):
            kw, kb = jax.random.split(kk)
            w = jax.random.uniform(kw, (e, e), jnp.float32, -bound, bound)
            b = jax.random.uniform(kb, (e,), jnp.float32, -bound, bound)
            return w, b

        wq, bq = proj(ks[0]); wk, bk = proj(ks[1])
        wv, bv = proj(ks[2]); wo, bo = proj(ks[3])
        return (wq, bq, wk, bk, wv, bv, wo, bo)

    k_xy, k_x, k_sa, k_ca = jax.random.split(key, 4)
    return {
        "xy_mlp": mlp(k_xy, INPUT_DIM + OUTPUT_DIM, DI_DIM, DI_DIM),
        "x_mlp": mlp(k_x, INPUT_DIM, DI_DIM, DI_DIM),
        "self_attn": mha(k_sa, DI_DIM),
        "cross_attn": mha(k_ca, DI_DIM),
    }


# ------------------------------ pure-JAX reference ------------------------------
def _mlp_ref(x, p):
    w0, b0, w1, b1, w2, b2 = p
    h = _gelu_exact(x @ w0 + b0)
    h = _gelu_exact(h @ w1 + b1)
    return h @ w2 + b2


def _mha_ref(q, k, v, p, num_heads):
    wq, bq, wk, bk, wv, bv, wo, bo = p
    bs, lq, e = q.shape
    lk = k.shape[1]
    hd = e // num_heads
    Q = (q @ wq + bq).reshape(bs, lq, num_heads, hd).transpose(0, 2, 1, 3)
    K = (k @ wk + bk).reshape(bs, lk, num_heads, hd).transpose(0, 2, 1, 3)
    V = (v @ wv + bv).reshape(bs, lk, num_heads, hd).transpose(0, 2, 1, 3)
    s = jnp.einsum("bhqd,bhkd->bhqk", Q, K) / math.sqrt(hd)
    p_attn = jax.nn.softmax(s, axis=-1)
    o = jnp.einsum("bhqk,bhkd->bhqd", p_attn, V)
    o = o.transpose(0, 2, 1, 3).reshape(bs, lq, e)
    return o @ wo + bo


def encoder_reference(x_context, y_context, x_target, params):
    xy = jnp.concatenate([x_context, y_context], axis=-1)
    xy_enc = _mlp_ref(xy, params["xy_mlp"])
    xt_enc = _mlp_ref(x_target, params["x_mlp"])
    rs = _mha_ref(xy_enc, xy_enc, xy_enc, params["self_attn"], SELF_ATTN_HEADS)
    rs = _mha_ref(xt_enc, xy_enc, rs, params["cross_attn"], CROSS_ATTN_HEADS)
    return jnp.mean(rs, axis=1, keepdims=True)


if __name__ == "__main__":
    key = jax.random.PRNGKey(0)
    kx, ky, kt, kp = jax.random.split(key, 4)

    bs, n_context, n_target = 2, 16, 8
    x_context = jax.random.normal(kx, (bs, n_context, INPUT_DIM), jnp.float32)
    y_context = jax.random.normal(ky, (bs, n_context, OUTPUT_DIM), jnp.float32)
    x_target = jax.random.normal(kt, (bs, n_target, INPUT_DIM), jnp.float32)

    params = init_params(kp)

    r = data_interaction_encoder(x_context, y_context, x_target, params)
    r = jax.block_until_ready(r)

    ref = encoder_reference(x_context, y_context, x_target, params)
    assert r.shape == (bs, 1, DI_DIM)
    # Tolerance covers the EUP approx-reciprocal in the softmax normalization.
    assert jnp.allclose(r, ref, atol=2e-3, rtol=2e-3), float(jnp.max(jnp.abs(r - ref)))

    print("KERNEL_OK")
</pallas_src>

<mosaic_0001>
module attributes {stable_mosaic.version = 11 : i64} {
  func.func @encoder_kernel(%arg0: i32, %arg1: memref<1x16x4xf32, #tpu.memory_space<vmem>>, %arg2: memref<1x16x4xf32, #tpu.memory_space<vmem>>, %arg3: memref<1x8x4xf32, #tpu.memory_space<vmem>>, %arg4: memref<4x32xf32, #tpu.memory_space<vmem>>, %arg5: memref<4x32xf32, #tpu.memory_space<vmem>>, %arg6: memref<1x32xf32, #tpu.memory_space<vmem>>, %arg7: memref<32x32xf32, #tpu.memory_space<vmem>>, %arg8: memref<1x32xf32, #tpu.memory_space<vmem>>, %arg9: memref<32x32xf32, #tpu.memory_space<vmem>>, %arg10: memref<1x32xf32, #tpu.memory_space<vmem>>, %arg11: memref<4x32xf32, #tpu.memory_space<vmem>>, %arg12: memref<1x32xf32, #tpu.memory_space<vmem>>, %arg13: memref<32x32xf32, #tpu.memory_space<vmem>>, %arg14: memref<1x32xf32, #tpu.memory_space<vmem>>, %arg15: memref<32x32xf32, #tpu.memory_space<vmem>>, %arg16: memref<1x32xf32, #tpu.memory_space<vmem>>, %arg17: memref<32x96xf32, #tpu.memory_space<vmem>>, %arg18: memref<1x96xf32, #tpu.memory_space<vmem>>, %arg19: memref<4x8x32xf32, #tpu.memory_space<vmem>>, %arg20: memref<1x32xf32, #tpu.memory_space<vmem>>, %arg21: memref<32x32xf32, #tpu.memory_space<vmem>>, %arg22: memref<1x32xf32, #tpu.memory_space<vmem>>, %arg23: memref<32x32xf32, #tpu.memory_space<vmem>>, %arg24: memref<1x32xf32, #tpu.memory_space<vmem>>, %arg25: memref<32x32xf32, #tpu.memory_space<vmem>>, %arg26: memref<1x32xf32, #tpu.memory_space<vmem>>, %arg27: memref<4x8x32xf32, #tpu.memory_space<vmem>>, %arg28: memref<1x32xf32, #tpu.memory_space<vmem>>, %arg29: memref<1x1x32xf32, #tpu.memory_space<vmem>>) attributes {dimension_semantics = [#tpu.dimension_semantics<parallel>], iteration_bounds = array<i64: 2>, scalar_prefetch = 0 : i64, scratch_operands = 0 : i64, tpu.core_type = #tpu.core_type<tc>, window_params = [{transform_indices = @transform_0, window_bounds = array<i64: 1, 16, 4>}, {transform_indices = @transform_1, window_bounds = array<i64: 1, 16, 4>}, {transform_indices = @transform_2, window_bounds = array<i64: 1, 8, 4>}, {pipeline_mode = #tpu.pipeline_mode<synchronous>, transform_indices = @transform_3, window_bounds = array<i64: 4, 32>}, {pipeline_mode = #tpu.pipeline_mode<synchronous>, transform_indices = @transform_4, window_bounds = array<i64: 4, 32>}, {pipeline_mode = #tpu.pipeline_mode<synchronous>, transform_indices = @transform_5, window_bounds = array<i64: 1, 32>}, {pipeline_mode = #tpu.pipeline_mode<synchronous>, transform_indices = @transform_6, window_bounds = array<i64: 32, 32>}, {pipeline_mode = #tpu.pipeline_mode<synchronous>, transform_indices = @transform_7, window_bounds = array<i64: 1, 32>}, {pipeline_mode = #tpu.pipeline_mode<synchronous>, transform_indices = @transform_8, window_bounds = array<i64: 32, 32>}, {pipeline_mode = #tpu.pipeline_mode<synchronous>, transform_indices = @transform_9, window_bounds = array<i64: 1, 32>}, {pipeline_mode = #tpu.pipeline_mode<synchronous>, transform_indices = @transform_10, window_bounds = array<i64: 4, 32>}, {pipeline_mode = #tpu.pipeline_mode<synchronous>, transform_indices = @transform_11, window_bounds = array<i64: 1, 32>}, {pipeline_mode = #tpu.pipeline_mode<synchronous>, transform_indices = @transform_12, window_bounds = array<i64: 32, 32>}, {pipeline_mode = #tpu.pipeline_mode<synchronous>, transform_indices = @transform_13, window_bounds = array<i64: 1, 32>}, {pipeline_mode = #tpu.pipeline_mode<synchronous>, transform_indices = @transform_14, window_bounds = array<i64: 32, 32>}, {pipeline_mode = #tpu.pipeline_mode<synchronous>, transform_indices = @transform_15, window_bounds = array<i64: 1, 32>}, {pipeline_mode = #tpu.pipeline_mode<synchronous>, transform_indices = @transform_16, window_bounds = array<i64: 32, 96>}, {pipeline_mode = #tpu.pipeline_mode<synchronous>, transform_indices = @transform_17, window_bounds = array<i64: 1, 96>}, {pipeline_mode = #tpu.pipeline_mode<synchronous>, transform_indices = @transform_18, window_bounds = array<i64: 4, 8, 32>}, {pipeline_mode = #tpu.pipeline_mode<synchronous>, transform_indices = @transform_19, window_bounds = array<i64: 1, 32>}, {pipeline_mode = #tpu.pipeline_mode<synchronous>, transform_indices = @transform_20, window_bounds = array<i64: 32, 32>}, {pipeline_mode = #tpu.pipeline_mode<synchronous>, transform_indices = @transform_21, window_bounds = array<i64: 1, 32>}, {pipeline_mode = #tpu.pipeline_mode<synchronous>, transform_indices = @transform_22, window_bounds = array<i64: 32, 32>}, {pipeline_mode = #tpu.pipeline_mode<synchronous>, transform_indices = @transform_23, window_bounds = array<i64: 1, 32>}, {pipeline_mode = #tpu.pipeline_mode<synchronous>, transform_indices = @transform_24, window_bounds = array<i64: 32, 32>}, {pipeline_mode = #tpu.pipeline_mode<synchronous>, transform_indices = @transform_25, window_bounds = array<i64: 1, 32>}, {pipeline_mode = #tpu.pipeline_mode<synchronous>, transform_indices = @transform_26, window_bounds = array<i64: 4, 8, 32>}, {pipeline_mode = #tpu.pipeline_mode<synchronous>, transform_indices = @transform_27, window_bounds = array<i64: 1, 32>}, {transform_indices = @transform_28, window_bounds = array<i64: 1, 1, 32>}]} {
    %c0 = arith.constant 0 : index
    %c0_0 = arith.constant 0 : index
    %c0_1 = arith.constant 0 : index
    %0 = vector.load %arg1[%c0, %c0_0, %c0_1] : memref<1x16x4xf32, #tpu.memory_space<vmem>>, vector<1x16x4xf32>
    %1 = vector.shape_cast %0 : vector<1x16x4xf32> to vector<16x4xf32>
    %c0_2 = arith.constant 0 : index
    %c0_3 = arith.constant 0 : index
    %c0_4 = arith.constant 0 : index
    %2 = vector.load %arg2[%c0_2, %c0_3, %c0_4] : memref<1x16x4xf32, #tpu.memory_space<vmem>>, vector<1x16x4xf32>
    %3 = vector.shape_cast %2 : vector<1x16x4xf32> to vector<16x4xf32>
    %c0_5 = arith.constant 0 : index
    %c0_6 = arith.constant 0 : index
    %c0_7 = arith.constant 0 : index
    %4 = vector.load %arg3[%c0_5, %c0_6, %c0_7] : memref<1x8x4xf32, #tpu.memory_space<vmem>>, vector<1x8x4xf32>
    %5 = vector.shape_cast %4 : vector<1x8x4xf32> to vector<8x4xf32>
    %c0_8 = arith.constant 0 : index
    %c0_9 = arith.constant 0 : index
    %6 = vector.load %arg4[%c0_8, %c0_9] : memref<4x32xf32, #tpu.memory_space<vmem>>, vector<4x32xf32>
    %cst = arith.constant dense<0.000000e+00> : vector<16x32xf32>
    %7 = tpu.matmul %1, %6, %cst {dimension_numbers = #tpu.dot_dimension_numbers<[1], [0], [0], [1], [0, 0, 1, 1], [], []>} : vector<16x4xf32>, vector<4x32xf32>, vector<16x32xf32> -> vector<16x32xf32>
    %c0_10 = arith.constant 0 : index
    %c0_11 = arith.constant 0 : index
    %8 = vector.load %arg5[%c0_10, %c0_11] : memref<4x32xf32, #tpu.memory_space<vmem>>, vector<4x32xf32>
    %cst_12 = arith.constant dense<0.000000e+00> : vector<16x32xf32>
    %9 = tpu.matmul %3, %8, %cst_12 {dimension_numbers = #tpu.dot_dimension_numbers<[1], [0], [0], [1], [0, 0, 1, 1], [], []>} : vector<16x4xf32>, vector<4x32xf32>, vector<16x32xf32> -> vector<16x32xf32>
    %10 = arith.addf %7, %9 : vector<16x32xf32>
    %c0_13 = arith.constant 0 : index
    %c0_14 = arith.constant 0 : index
    %11 = vector.load %arg6[%c0_13, %c0_14] : memref<1x32xf32, #tpu.memory_space<vmem>>, vector<1x32xf32>
    %12 = vector.broadcast %11 : vector<1x32xf32> to vector<16x32xf32>
    %13 = arith.addf %10, %12 : vector<16x32xf32>
    %cst_15 = arith.constant 5.000000e-01 : f32
    %14 = vector.broadcast %cst_15 : f32 to vector<16x32xf32>
    %15 = arith.mulf %14, %13 : vector<16x32xf32>
    %cst_16 = arith.constant 0.707106769 : f32
    %16 = vector.broadcast %cst_16 : f32 to vector<16x32xf32>
    %17 = arith.mulf %13, %16 : vector<16x32xf32>
    %18 = math.erf %17 : vector<16x32xf32>
    %cst_17 = arith.constant 1.000000e+00 : f32
    %19 = vector.broadcast %cst_17 : f32 to vector<16x32xf32>
    %20 = arith.addf %19, %18 : vector<16x32xf32>
    %21 = arith.mulf %15, %20 : vector<16x32xf32>
    %c0_18 = arith.constant 0 : index
    %c0_19 = arith.constant 0 : index
    %22 = vector.load %arg7[%c0_18, %c0_19] : memref<32x32xf32, #tpu.memory_space<vmem>>, vector<32x32xf32>
    %cst_20 = arith.constant dense<0.000000e+00> : vector<16x32xf32>
    %23 = tpu.matmul %21, %22, %cst_20 {dimension_numbers = #tpu.dot_dimension_numbers<[1], [0], [0], [1], [0, 0, 1, 1], [], []>} : vector<16x32xf32>, vector<32x32xf32>, vector<16x32xf32> -> vector<16x32xf32>
    %c0_21 = arith.constant 0 : index
    %c0_22 = arith.constant 0 : index
    %24 = vector.load %arg8[%c0_21, %c0_22] : memref<1x32xf32, #tpu.memory_space<vmem>>, vector<1x32xf32>
    %25 = vector.broadcast %24 : vector<1x32xf32> to vector<16x32xf32>
    %26 = arith.addf %23, %25 : vector<16x32xf32>
    %cst_23 = arith.constant 5.000000e-01 : f32
    %27 = vector.broadcast %cst_23 : f32 to vector<16x32xf32>
    %28 = arith.mulf %27, %26 : vector<16x32xf32>
    %cst_24 = arith.constant 0.707106769 : f32
    %29 = vector.broadcast %cst_24 : f32 to vector<16x32xf32>
    %30 = arith.mulf %26, %29 : vector<16x32xf32>
    %31 = math.erf %30 : vector<16x32xf32>
    %cst_25 = arith.constant 1.000000e+00 : f32
    %32 = vector.broadcast %cst_25 : f32 to vector<16x32xf32>
    %33 = arith.addf %32, %31 : vector<16x32xf32>
    %34 = arith.mulf %28, %33 : vector<16x32xf32>
    %c0_26 = arith.constant 0 : index
    %c0_27 = arith.constant 0 : index
    %35 = vector.load %arg9[%c0_26, %c0_27] : memref<32x32xf32, #tpu.memory_space<vmem>>, vector<32x32xf32>
    %cst_28 = arith.constant dense<0.000000e+00> : vector<16x32xf32>
    %36 = tpu.matmul %34, %35, %cst_28 {dimension_numbers = #tpu.dot_dimension_numbers<[1], [0], [0], [1], [0, 0, 1, 1], [], []>} : vector<16x32xf32>, vector<32x32xf32>, vector<16x32xf32> -> vector<16x32xf32>
    %c0_29 = arith.constant 0 : index
    %c0_30 = arith.constant 0 : index
    %37 = vector.load %arg10[%c0_29, %c0_30] : memref<1x32xf32, #tpu.memory_space<vmem>>, vector<1x32xf32>
    %38 = vector.broadcast %37 : vector<1x32xf32> to vector<16x32xf32>
    %39 = arith.addf %36, %38 : vector<16x32xf32>
    %c0_31 = arith.constant 0 : index
    %c0_32 = arith.constant 0 : index
    %40 = vector.load %arg11[%c0_31, %c0_32] : memref<4x32xf32, #tpu.memory_space<vmem>>, vector<4x32xf32>
    %cst_33 = arith.constant dense<0.000000e+00> : vector<8x32xf32>
    %41 = tpu.matmul %5, %40, %cst_33 {dimension_numbers = #tpu.dot_dimension_numbers<[1], [0], [0], [1], [0, 0, 1, 1], [], []>} : vector<8x4xf32>, vector<4x32xf32>, vector<8x32xf32> -> vector<8x32xf32>
    %c0_34 = arith.constant 0 : index
    %c0_35 = arith.constant 0 : index
    %42 = vector.load %arg12[%c0_34, %c0_35] : memref<1x32xf32, #tpu.memory_space<vmem>>, vector<1x32xf32>
    %43 = vector.broadcast %42 : vector<1x32xf32> to vector<8x32xf32>
    %44 = arith.addf %41, %43 : vector<8x32xf32>
    %cst_36 = arith.constant 5.000000e-01 : f32
    %45 = vector.broadcast %cst_36 : f32 to vector<8x32xf32>
    %46 = arith.mulf %45, %44 : vector<8x32xf32>
    %cst_37 = arith.constant 0.707106769 : f32
    %47 = vector.broadcast %cst_37 : f32 to vector<8x32xf32>
    %48 = arith.mulf %44, %47 : vector<8x32xf32>
    %49 = math.erf %48 : vector<8x32xf32>
    %cst_38 = arith.constant 1.000000e+00 : f32
    %50 = vector.broadcast %cst_38 : f32 to vector<8x32xf32>
    %51 = arith.addf %50, %49 : vector<8x32xf32>
    %52 = arith.mulf %46, %51 : vector<8x32xf32>
    %c0_39 = arith.constant 0 : index
    %c0_40 = arith.constant 0 : index
    %53 = vector.load %arg13[%c0_39, %c0_40] : memref<32x32xf32, #tpu.memory_space<vmem>>, vector<32x32xf32>
    %cst_41 = arith.constant dense<0.000000e+00> : vector<8x32xf32>
    %54 = tpu.matmul %52, %53, %cst_41 {dimension_numbers = #tpu.dot_dimension_numbers<[1], [0], [0], [1], [0, 0, 1, 1], [], []>} : vector<8x32xf32>, vector<32x32xf32>, vector<8x32xf32> -> vector<8x32xf32>
    %c0_42 = arith.constant 0 : index
    %c0_43 = arith.constant 0 : index
    %55 = vector.load %arg14[%c0_42, %c0_43] : memref<1x32xf32, #tpu.memory_space<vmem>>, vector<1x32xf32>
    %56 = vector.broadcast %55 : vector<1x32xf32> to vector<8x32xf32>
    %57 = arith.addf %54, %56 : vector<8x32xf32>
    %cst_44 = arith.constant 5.000000e-01 : f32
    %58 = vector.broadcast %cst_44 : f32 to vector<8x32xf32>
    %59 = arith.mulf %58, %57 : vector<8x32xf32>
    %cst_45 = arith.constant 0.707106769 : f32
    %60 = vector.broadcast %cst_45 : f32 to vector<8x32xf32>
    %61 = arith.mulf %57, %60 : vector<8x32xf32>
    %62 = math.erf %61 : vector<8x32xf32>
    %cst_46 = arith.constant 1.000000e+00 : f32
    %63 = vector.broadcast %cst_46 : f32 to vector<8x32xf32>
    %64 = arith.addf %63, %62 : vector<8x32xf32>
    %65 = arith.mulf %59, %64 : vector<8x32xf32>
    %c0_47 = arith.constant 0 : index
    %c0_48 = arith.constant 0 : index
    %66 = vector.load %arg15[%c0_47, %c0_48] : memref<32x32xf32, #tpu.memory_space<vmem>>, vector<32x32xf32>
    %cst_49 = arith.constant dense<0.000000e+00> : vector<8x32xf32>
    %67 = tpu.matmul %65, %66, %cst_49 {dimension_numbers = #tpu.dot_dimension_numbers<[1], [0], [0], [1], [0, 0, 1, 1], [], []>} : vector<8x32xf32>, vector<32x32xf32>, vector<8x32xf32> -> vector<8x32xf32>
    %c0_50 = arith.constant 0 : index
    %c0_51 = arith.constant 0 : index
    %68 = vector.load %arg16[%c0_50, %c0_51] : memref<1x32xf32, #tpu.memory_space<vmem>>, vector<1x32xf32>
    %69 = vector.broadcast %68 : vector<1x32xf32> to vector<8x32xf32>
    %70 = arith.addf %67, %69 : vector<8x32xf32>
    %c0_52 = arith.constant 0 : index
    %c0_53 = arith.constant 0 : index
    %71 = vector.load %arg17[%c0_52, %c0_53] : memref<32x96xf32, #tpu.memory_space<vmem>>, vector<32x96xf32>
    %cst_54 = arith.constant dense<0.000000e+00> : vector<16x96xf32>
    %72 = tpu.matmul %39, %71, %cst_54 {dimension_numbers = #tpu.dot_dimension_numbers<[1], [0], [0], [1], [0, 0, 1, 1], [], []>} : vector<16x32xf32>, vector<32x96xf32>, vector<16x96xf32> -> vector<16x96xf32>
    %c0_55 = arith.constant 0 : index
    %c0_56 = arith.constant 0 : index
    %73 = vector.load %arg18[%c0_55, %c0_56] : memref<1x96xf32, #tpu.memory_space<vmem>>, vector<1x96xf32>
    %74 = vector.broadcast %73 : vector<1x96xf32> to vector<16x96xf32>
    %75 = arith.addf %72, %74 : vector<16x96xf32>
    %76 = vector.extract_strided_slice %75 {offsets = [0, 0], sizes = [16, 32], strides = [1, 1]} : vector<16x96xf32> to vector<16x32xf32>
    %77 = vector.extract_strided_slice %75 {offsets = [0, 32], sizes = [16, 32], strides = [1, 1]} : vector<16x96xf32> to vector<16x32xf32>
    %78 = vector.extract_strided_slice %75 {offsets = [0, 64], sizes = [16, 32], strides = [1, 1]} : vector<16x96xf32> to vector<16x32xf32>
    %cst_57 = arith.constant 0.000000e+00 : f32
    %79 = vector.broadcast %cst_57 : f32 to vector<16x32xf32>
    %80 = vector.extract_strided_slice %76 {offsets = [0, 0], sizes = [16, 8], strides = [1, 1]} : vector<16x32xf32> to vector<16x8xf32>
    %81 = vector.extract_strided_slice %77 {offsets = [0, 0], sizes = [16, 8], strides = [1, 1]} : vector<16x32xf32> to vector<16x8xf32>
    %82 = vector.extract_strided_slice %78 {offsets = [0, 0], sizes = [16, 8], strides = [1, 1]} : vector<16x32xf32> to vector<16x8xf32>
    %cst_58 = arith.constant 0.353553385 : f32
    %83 = vector.broadcast %cst_58 : f32 to vector<16x8xf32>
    %84 = arith.mulf %80, %83 : vector<16x8xf32>
    %cst_59 = arith.constant dense<0.000000e+00> : vector<16x16xf32>
    %85 = tpu.matmul %84, %81, %cst_59 {dimension_numbers = #tpu.dot_dimension_numbers<[1], [1], [0], [0], [0, 0, 1, 0], [], []>} : vector<16x8xf32>, vector<16x8xf32>, vector<16x16xf32> -> vector<16x16xf32>
    %cst_60 = arith.constant dense<0xFF800000> : vector<16xf32>
    %86 = vector.multi_reduction <maximumf>, %85, %cst_60 [1] : vector<16x16xf32> to vector<16xf32>
    %87 = vector.shape_cast %86 : vector<16xf32> to vector<16x1xf32>
    %88 = vector.broadcast %87 : vector<16x1xf32> to vector<16x16xf32>
    %89 = arith.subf %85, %88 : vector<16x16xf32>
    %90 = math.exp %89 : vector<16x16xf32>
    %cst_61 = arith.constant dense<0.000000e+00> : vector<16xf32>
    %91 = vector.multi_reduction <add>, %90, %cst_61 [1] : vector<16x16xf32> to vector<16xf32>
    %92 = vector.shape_cast %91 : vector<16xf32> to vector<16x1xf32>
    %93 = tpu.reciprocal %92 {approx = true} : vector<16x1xf32> -> vector<16x1xf32>
    %94 = vector.broadcast %93 : vector<16x1xf32> to vector<16x16xf32>
    %95 = arith.mulf %90, %94 : vector<16x16xf32>
    %cst_62 = arith.constant dense<0.000000e+00> : vector<16x8xf32>
    %96 = tpu.matmul %95, %82, %cst_62 {dimension_numbers = #tpu.dot_dimension_numbers<[1], [0], [0], [1], [0, 0, 1, 1], [], []>} : vector<16x16xf32>, vector<16x8xf32>, vector<16x8xf32> -> vector<16x8xf32>
    %c0_63 = arith.constant 0 : index
    %c0_64 = arith.constant 0 : index
    %c0_65 = arith.constant 0 : index
    %97 = vector.load %arg19[%c0_63, %c0_64, %c0_65] : memref<4x8x32xf32, #tpu.memory_space<vmem>>, vector<1x8x32xf32>
    %98 = vector.shape_cast %97 : vector<1x8x32xf32> to vector<8x32xf32>
    %cst_66 = arith.constant dense<0.000000e+00> : vector<16x32xf32>
    %99 = tpu.matmul %96, %98, %cst_66 {dimension_numbers = #tpu.dot_dimension_numbers<[1], [0], [0], [1], [0, 0, 1, 1], [], []>} : vector<16x8xf32>, vector<8x32xf32>, vector<16x32xf32> -> vector<16x32xf32>
    %100 = arith.addf %79, %99 : vector<16x32xf32>
    %101 = vector.extract_strided_slice %76 {offsets = [0, 8], sizes = [16, 8], strides = [1, 1]} : vector<16x32xf32> to vector<16x8xf32>
    %102 = vector.extract_strided_slice %77 {offsets = [0, 8], sizes = [16, 8], strides = [1, 1]} : vector<16x32xf32> to vector<16x8xf32>
    %103 = vector.extract_strided_slice %78 {offsets = [0, 8], sizes = [16, 8], strides = [1, 1]} : vector<16x32xf32> to vector<16x8xf32>
    %cst_67 = arith.constant 0.353553385 : f32
    %104 = vector.broadcast %cst_67 : f32 to vector<16x8xf32>
    %105 = arith.mulf %101, %104 : vector<16x8xf32>
    %cst_68 = arith.constant dense<0.000000e+00> : vector<16x16xf32>
    %106 = tpu.matmul %105, %102, %cst_68 {dimension_numbers = #tpu.dot_dimension_numbers<[1], [1], [0], [0], [0, 0, 1, 0], [], []>} : vector<16x8xf32>, vector<16x8xf32>, vector<16x16xf32> -> vector<16x16xf32>
    %cst_69 = arith.constant dense<0xFF800000> : vector<16xf32>
    %107 = vector.multi_reduction <maximumf>, %106, %cst_69 [1] : vector<16x16xf32> to vector<16xf32>
    %108 = vector.shape_cast %107 : vector<16xf32> to vector<16x1xf32>
    %109 = vector.broadcast %108 : vector<16x1xf32> to vector<16x16xf32>
    %110 = arith.subf %106, %109 : vector<16x16xf32>
    %111 = math.exp %110 : vector<16x16xf32>
    %cst_70 = arith.constant dense<0.000000e+00> : vector<16xf32>
    %112 = vector.multi_reduction <add>, %111, %cst_70 [1] : vector<16x16xf32> to vector<16xf32>
    %113 = vector.shape_cast %112 : vector<16xf32> to vector<16x1xf32>
    %114 = tpu.reciprocal %113 {approx = true} : vector<16x1xf32> -> vector<16x1xf32>
    %115 = vector.broadcast %114 : vector<16x1xf32> to vector<16x16xf32>
    %116 = arith.mulf %111, %115 : vector<16x16xf32>
    %cst_71 = arith.constant dense<0.000000e+00> : vector<16x8xf32>
    %117 = tpu.matmul %116, %103, %cst_71 {dimension_numbers = #tpu.dot_dimension_numbers<[1], [0], [0], [1], [0, 0, 1, 1], [], []>} : vector<16x16xf32>, vector<16x8xf32>, vector<16x8xf32> -> vector<16x8xf32>
    %c1 = arith.constant 1 : index
    %c0_72 = arith.constant 0 : index
    %c0_73 = arith.constant 0 : index
    %118 = vector.load %arg19[%c1, %c0_72, %c0_73] : memref<4x8x32xf32, #tpu.memory_space<vmem>>, vector<1x8x32xf32>
    %119 = vector.shape_cast %118 : vector<1x8x32xf32> to vector<8x32xf32>
    %cst_74 = arith.constant dense<0.000000e+00> : vector<16x32xf32>
    %120 = tpu.matmul %117, %119, %cst_74 {dimension_numbers = #tpu.dot_dimension_numbers<[1], [0], [0], [1], [0, 0, 1, 1], [], []>} : vector<16x8xf32>, vector<8x32xf32>, vector<16x32xf32> -> vector<16x32xf32>
    %121 = arith.addf %100, %120 : vector<16x32xf32>
    %122 = vector.extract_strided_slice %76 {offsets = [0, 16], sizes = [16, 8], strides = [1, 1]} : vector<16x32xf32> to vector<16x8xf32>
    %123 = vector.extract_strided_slice %77 {offsets = [0, 16], sizes = [16, 8], strides = [1, 1]} : vector<16x32xf32> to vector<16x8xf32>
    %124 = vector.extract_strided_slice %78 {offsets = [0, 16], sizes = [16, 8], strides = [1, 1]} : vector<16x32xf32> to vector<16x8xf32>
    %cst_75 = arith.constant 0.353553385 : f32
    %125 = vector.broadcast %cst_75 : f32 to vector<16x8xf32>
    %126 = arith.mulf %122, %125 : vector<16x8xf32>
    %cst_76 = arith.constant dense<0.000000e+00> : vector<16x16xf32>
    %127 = tpu.matmul %126, %123, %cst_76 {dimension_numbers = #tpu.dot_dimension_numbers<[1], [1], [0], [0], [0, 0, 1, 0], [], []>} : vector<16x8xf32>, vector<16x8xf32>, vector<16x16xf32> -> vector<16x16xf32>
    %cst_77 = arith.constant dense<0xFF800000> : vector<16xf32>
    %128 = vector.multi_reduction <maximumf>, %127, %cst_77 [1] : vector<16x16xf32> to vector<16xf32>
    %129 = vector.shape_cast %128 : vector<16xf32> to vector<16x1xf32>
    %130 = vector.broadcast %129 : vector<16x1xf32> to vector<16x16xf32>
    %131 = arith.subf %127, %130 : vector<16x16xf32>
    %132 = math.exp %131 : vector<16x16xf32>
    %cst_78 = arith.constant dense<0.000000e+00> : vector<16xf32>
    %133 = vector.multi_reduction <add>, %132, %cst_78 [1] : vector<16x16xf32> to vector<16xf32>
    %134 = vector.shape_cast %133 : vector<16xf32> to vector<16x1xf32>
    %135 = tpu.reciprocal %134 {approx = true} : vector<16x1xf32> -> vector<16x1xf32>
    %136 = vector.broadcast %135 : vector<16x1xf32> to vector<16x16xf32>
    %137 = arith.mulf %132, %136 : vector<16x16xf32>
    %cst_79 = arith.constant dense<0.000000e+00> : vector<16x8xf32>
    %138 = tpu.matmul %137, %124, %cst_79 {dimension_numbers = #tpu.dot_dimension_numbers<[1], [0], [0], [1], [0, 0, 1, 1], [], []>} : vector<16x16xf32>, vector<16x8xf32>, vector<16x8xf32> -> vector<16x8xf32>
    %c2 = arith.constant 2 : index
    %c0_80 = arith.constant 0 : index
    %c0_81 = arith.constant 0 : index
    %139 = vector.load %arg19[%c2, %c0_80, %c0_81] : memref<4x8x32xf32, #tpu.memory_space<vmem>>, vector<1x8x32xf32>
    %140 = vector.shape_cast %139 : vector<1x8x32xf32> to vector<8x32xf32>
    %cst_82 = arith.constant dense<0.000000e+00> : vector<16x32xf32>
    %141 = tpu.matmul %138, %140, %cst_82 {dimension_numbers = #tpu.dot_dimension_numbers<[1], [0], [0], [1], [0, 0, 1, 1], [], []>} : vector<16x8xf32>, vector<8x32xf32>, vector<16x32xf32> -> vector<16x32xf32>
    %142 = arith.addf %121, %141 : vector<16x32xf32>
    %143 = vector.extract_strided_slice %76 {offsets = [0, 24], sizes = [16, 8], strides = [1, 1]} : vector<16x32xf32> to vector<16x8xf32>
    %144 = vector.extract_strided_slice %77 {offsets = [0, 24], sizes = [16, 8], strides = [1, 1]} : vector<16x32xf32> to vector<16x8xf32>
    %145 = vector.extract_strided_slice %78 {offsets = [0, 24], sizes = [16, 8], strides = [1, 1]} : vector<16x32xf32> to vector<16x8xf32>
    %cst_83 = arith.constant 0.353553385 : f32
    %146 = vector.broadcast %cst_83 : f32 to vector<16x8xf32>
    %147 = arith.mulf %143, %146 : vector<16x8xf32>
    %cst_84 = arith.constant dense<0.000000e+00> : vector<16x16xf32>
    %148 = tpu.matmul %147, %144, %cst_84 {dimension_numbers = #tpu.dot_dimension_numbers<[1], [1], [0], [0], [0, 0, 1, 0], [], []>} : vector<16x8xf32>, vector<16x8xf32>, vector<16x16xf32> -> vector<16x16xf32>
    %cst_85 = arith.constant dense<0xFF800000> : vector<16xf32>
    %149 = vector.multi_reduction <maximumf>, %148, %cst_85 [1] : vector<16x16xf32> to vector<16xf32>
    %150 = vector.shape_cast %149 : vector<16xf32> to vector<16x1xf32>
    %151 = vector.broadcast %150 : vector<16x1xf32> to vector<16x16xf32>
    %152 = arith.subf %148, %151 : vector<16x16xf32>
    %153 = math.exp %152 : vector<16x16xf32>
    %cst_86 = arith.constant dense<0.000000e+00> : vector<16xf32>
    %154 = vector.multi_reduction <add>, %153, %cst_86 [1] : vector<16x16xf32> to vector<16xf32>
    %155 = vector.shape_cast %154 : vector<16xf32> to vector<16x1xf32>
    %156 = tpu.reciprocal %155 {approx = true} : vector<16x1xf32> -> vector<16x1xf32>
    %157 = vector.broadcast %156 : vector<16x1xf32> to vector<16x16xf32>
    %158 = arith.mulf %153, %157 : vector<16x16xf32>
    %cst_87 = arith.constant dense<0.000000e+00> : vector<16x8xf32>
    %159 = tpu.matmul %158, %145, %cst_87 {dimension_numbers = #tpu.dot_dimension_numbers<[1], [0], [0], [1], [0, 0, 1, 1], [], []>} : vector<16x16xf32>, vector<16x8xf32>, vector<16x8xf32> -> vector<16x8xf32>
    %c3 = arith.constant 3 : index
    %c0_88 = arith.constant 0 : index
    %c0_89 = arith.constant 0 : index
    %160 = vector.load %arg19[%c3, %c0_88, %c0_89] : memref<4x8x32xf32, #tpu.memory_space<vmem>>, vector<1x8x32xf32>
    %161 = vector.shape_cast %160 : vector<1x8x32xf32> to vector<8x32xf32>
    %cst_90 = arith.constant dense<0.000000e+00> : vector<16x32xf32>
    %162 = tpu.matmul %159, %161, %cst_90 {dimension_numbers = #tpu.dot_dimension_numbers<[1], [0], [0], [1], [0, 0, 1, 1], [], []>} : vector<16x8xf32>, vector<8x32xf32>, vector<16x32xf32> -> vector<16x32xf32>
    %163 = arith.addf %142, %162 : vector<16x32xf32>
    %c0_91 = arith.constant 0 : index
    %c0_92 = arith.constant 0 : index
    %164 = vector.load %arg20[%c0_91, %c0_92] : memref<1x32xf32, #tpu.memory_space<vmem>>, vector<1x32xf32>
    %165 = vector.broadcast %164 : vector<1x32xf32> to vector<16x32xf32>
    %166 = arith.addf %163, %165 : vector<16x32xf32>
    %c0_93 = arith.constant 0 : index
    %c0_94 = arith.constant 0 : index
    %167 = vector.load %arg21[%c0_93, %c0_94] : memref<32x32xf32, #tpu.memory_space<vmem>>, vector<32x32xf32>
    %cst_95 = arith.constant dense<0.000000e+00> : vector<8x32xf32>
    %168 = tpu.matmul %70, %167, %cst_95 {dimension_numbers = #tpu.dot_dimension_numbers<[1], [0], [0], [1], [0, 0, 1, 1], [], []>} : vector<8x32xf32>, vector<32x32xf32>, vector<8x32xf32> -> vector<8x32xf32>
    %c0_96 = arith.constant 0 : index
    %c0_97 = arith.constant 0 : index
    %169 = vector.load %arg22[%c0_96, %c0_97] : memref<1x32xf32, #tpu.memory_space<vmem>>, vector<1x32xf32>
    %170 = vector.broadcast %169 : vector<1x32xf32> to vector<8x32xf32>
    %171 = arith.addf %168, %170 : vector<8x32xf32>
    %c0_98 = arith.constant 0 : index
    %c0_99 = arith.constant 0 : index
    %172 = vector.load %arg23[%c0_98, %c0_99] : memref<32x32xf32, #tpu.memory_space<vmem>>, vector<32x32xf32>
    %cst_100 = arith.constant dense<0.000000e+00> : vector<16x32xf32>
    %173 = tpu.matmul %39, %172, %cst_100 {dimension_numbers = #tpu.dot_dimension_numbers<[1], [0], [0], [1], [0, 0, 1, 1], [], []>} : vector<16x32xf32>, vector<32x32xf32>, vector<16x32xf32> -> vector<16x32xf32>
    %c0_101 = arith.constant 0 : index
    %c0_102 = arith.constant 0 : index
    %174 = vector.load %arg24[%c0_101, %c0_102] : memref<1x32xf32, #tpu.memory_space<vmem>>, vector<1x32xf32>
    %175 = vector.broadcast %174 : vector<1x32xf32> to vector<16x32xf32>
    %176 = arith.addf %173, %175 : vector<16x32xf32>
    %c0_103 = arith.constant 0 : index
    %c0_104 = arith.constant 0 : index
    %177 = vector.load %arg25[%c0_103, %c0_104] : memref<32x32xf32, #tpu.memory_space<vmem>>, vector<32x32xf32>
    %cst_105 = arith.constant dense<0.000000e+00> : vector<16x32xf32>
    %178 = tpu.matmul %166, %177, %cst_105 {dimension_numbers = #tpu.dot_dimension_numbers<[1], [0], [0], [1], [0, 0, 1, 1], [], []>} : vector<16x32xf32>, vector<32x32xf32>, vector<16x32xf32> -> vector<16x32xf32>
    %c0_106 = arith.constant 0 : index
    %c0_107 = arith.constant 0 : index
    %179 = vector.load %arg26[%c0_106, %c0_107] : memref<1x32xf32, #tpu.memory_space<vmem>>, vector<1x32xf32>
    %180 = vector.broadcast %179 : vector<1x32xf32> to vector<16x32xf32>
    %181 = arith.addf %178, %180 : vector<16x32xf32>
    %cst_108 = arith.constant 0.000000e+00 : f32
    %182 = vector.broadcast %cst_108 : f32 to vector<8x32xf32>
    %183 = vector.extract_strided_slice %171 {offsets = [0, 0], sizes = [8, 8], strides = [1, 1]} : vector<8x32xf32> to vector<8x8xf32>
    %184 = vector.extract_strided_slice %176 {offsets = [0, 0], sizes = [16, 8], strides = [1, 1]} : vector<16x32xf32> to vector<16x8xf32>
    %185 = vector.extract_strided_slice %181 {offsets = [0, 0], sizes = [16, 8], strides = [1, 1]} : vector<16x32xf32> to vector<16x8xf32>
    %cst_109 = arith.constant 0.353553385 : f32
    %186 = vector.broadcast %cst_109 : f32 to vector<8x8xf32>
    %187 = arith.mulf %183, %186 : vector<8x8xf32>
    %cst_110 = arith.constant dense<0.000000e+00> : vector<8x16xf32>
    %188 = tpu.matmul %187, %184, %cst_110 {dimension_numbers = #tpu.dot_dimension_numbers<[1], [1], [0], [0], [0, 0, 1, 0], [], []>} : vector<8x8xf32>, vector<16x8xf32>, vector<8x16xf32> -> vector<8x16xf32>
    %cst_111 = arith.constant dense<0xFF800000> : vector<8xf32>
    %189 = vector.multi_reduction <maximumf>, %188, %cst_111 [1] : vector<8x16xf32> to vector<8xf32>
    %190 = vector.shape_cast %189 : vector<8xf32> to vector<8x1xf32>
    %191 = vector.broadcast %190 : vector<8x1xf32> to vector<8x16xf32>
    %192 = arith.subf %188, %191 : vector<8x16xf32>
    %193 = math.exp %192 : vector<8x16xf32>
    %cst_112 = arith.constant dense<0.000000e+00> : vector<8xf32>
    %194 = vector.multi_reduction <add>, %193, %cst_112 [1] : vector<8x16xf32> to vector<8xf32>
    %195 = vector.shape_cast %194 : vector<8xf32> to vector<8x1xf32>
    %196 = tpu.reciprocal %195 {approx = true} : vector<8x1xf32> -> vector<8x1xf32>
    %197 = vector.broadcast %196 : vector<8x1xf32> to vector<8x16xf32>
    %198 = arith.mulf %193, %197 : vector<8x16xf32>
    %cst_113 = arith.constant dense<0.000000e+00> : vector<8x8xf32>
    %199 = tpu.matmul %198, %185, %cst_113 {dimension_numbers = #tpu.dot_dimension_numbers<[1], [0], [0], [1], [0, 0, 1, 1], [], []>} : vector<8x16xf32>, vector<16x8xf32>, vector<8x8xf32> -> vector<8x8xf32>
    %c0_114 = arith.constant 0 : index
    %c0_115 = arith.constant 0 : index
    %c0_116 = arith.constant 0 : index
    %200 = vector.load %arg27[%c0_114, %c0_115, %c0_116] : memref<4x8x32xf32, #tpu.memory_space<vmem>>, vector<1x8x32xf32>
    %201 = vector.shape_cast %200 : vector<1x8x32xf32> to vector<8x32xf32>
    %cst_117 = arith.constant dense<0.000000e+00> : vector<8x32xf32>
    %202 = tpu.matmul %199, %201, %cst_117 {dimension_numbers = #tpu.dot_dimension_numbers<[1], [0], [0], [1], [0, 0, 1, 1], [], []>} : vector<8x8xf32>, vector<8x32xf32>, vector<8x32xf32> -> vector<8x32xf32>
    %203 = arith.addf %182, %202 : vector<8x32xf32>
    %204 = vector.extract_strided_slice %171 {offsets = [0, 8], sizes = [8, 8], strides = [1, 1]} : vector<8x32xf32> to vector<8x8xf32>
    %205 = vector.extract_strided_slice %176 {offsets = [0, 8], sizes = [16, 8], strides = [1, 1]} : vector<16x32xf32> to vector<16x8xf32>
    %206 = vector.extract_strided_slice %181 {offsets = [0, 8], sizes = [16, 8], strides = [1, 1]} : vector<16x32xf32> to vector<16x8xf32>
    %cst_118 = arith.constant 0.353553385 : f32
    %207 = vector.broadcast %cst_118 : f32 to vector<8x8xf32>
    %208 = arith.mulf %204, %207 : vector<8x8xf32>
    %cst_119 = arith.constant dense<0.000000e+00> : vector<8x16xf32>
    %209 = tpu.matmul %208, %205, %cst_119 {dimension_numbers = #tpu.dot_dimension_numbers<[1], [1], [0], [0], [0, 0, 1, 0], [], []>} : vector<8x8xf32>, vector<16x8xf32>, vector<8x16xf32> -> vector<8x16xf32>
    %cst_120 = arith.constant dense<0xFF800000> : vector<8xf32>
    %210 = vector.multi_reduction <maximumf>, %209, %cst_120 [1] : vector<8x16xf32> to vector<8xf32>
    %211 = vector.shape_cast %210 : vector<8xf32> to vector<8x1xf32>
    %212 = vector.broadcast %211 : vector<8x1xf32> to vector<8x16xf32>
    %213 = arith.subf %209, %212 : vector<8x16xf32>
    %214 = math.exp %213 : vector<8x16xf32>
    %cst_121 = arith.constant dense<0.000000e+00> : vector<8xf32>
    %215 = vector.multi_reduction <add>, %214, %cst_121 [1] : vector<8x16xf32> to vector<8xf32>
    %216 = vector.shape_cast %215 : vector<8xf32> to vector<8x1xf32>
    %217 = tpu.reciprocal %216 {approx = true} : vector<8x1xf32> -> vector<8x1xf32>
    %218 = vector.broadcast %217 : vector<8x1xf32> to vector<8x16xf32>
    %219 = arith.mulf %214, %218 : vector<8x16xf32>
    %cst_122 = arith.constant dense<0.000000e+00> : vector<8x8xf32>
    %220 = tpu.matmul %219, %206, %cst_122 {dimension_numbers = #tpu.dot_dimension_numbers<[1], [0], [0], [1], [0, 0, 1, 1], [], []>} : vector<8x16xf32>, vector<16x8xf32>, vector<8x8xf32> -> vector<8x8xf32>
    %c1_123 = arith.constant 1 : index
    %c0_124 = arith.constant 0 : index
    %c0_125 = arith.constant 0 : index
    %221 = vector.load %arg27[%c1_123, %c0_124, %c0_125] : memref<4x8x32xf32, #tpu.memory_space<vmem>>, vector<1x8x32xf32>
    %222 = vector.shape_cast %221 : vector<1x8x32xf32> to vector<8x32xf32>
    %cst_126 = arith.constant dense<0.000000e+00> : vector<8x32xf32>
    %223 = tpu.matmul %220, %222, %cst_126 {dimension_numbers = #tpu.dot_dimension_numbers<[1], [0], [0], [1], [0, 0, 1, 1], [], []>} : vector<8x8xf32>, vector<8x32xf32>, vector<8x32xf32> -> vector<8x32xf32>
    %224 = arith.addf %203, %223 : vector<8x32xf32>
    %225 = vector.extract_strided_slice %171 {offsets = [0, 16], sizes = [8, 8], strides = [1, 1]} : vector<8x32xf32> to vector<8x8xf32>
    %226 = vector.extract_strided_slice %176 {offsets = [0, 16], sizes = [16, 8], strides = [1, 1]} : vector<16x32xf32> to vector<16x8xf32>
    %227 = vector.extract_strided_slice %181 {offsets = [0, 16], sizes = [16, 8], strides = [1, 1]} : vector<16x32xf32> to vector<16x8xf32>
    %cst_127 = arith.constant 0.353553385 : f32
    %228 = vector.broadcast %cst_127 : f32 to vector<8x8xf32>
    %229 = arith.mulf %225, %228 : vector<8x8xf32>
    %cst_128 = arith.constant dense<0.000000e+00> : vector<8x16xf32>
    %230 = tpu.matmul %229, %226, %cst_128 {dimension_numbers = #tpu.dot_dimension_numbers<[1], [1], [0], [0], [0, 0, 1, 0], [], []>} : vector<8x8xf32>, vector<16x8xf32>, vector<8x16xf32> -> vector<8x16xf32>
    %cst_129 = arith.constant dense<0xFF800000> : vector<8xf32>
    %231 = vector.multi_reduction <maximumf>, %230, %cst_129 [1] : vector<8x16xf32> to vector<8xf32>
    %232 = vector.shape_cast %231 : vector<8xf32> to vector<8x1xf32>
    %233 = vector.broadcast %232 : vector<8x1xf32> to vector<8x16xf32>
    %234 = arith.subf %230, %233 : vector<8x16xf32>
    %235 = math.exp %234 : vector<8x16xf32>
    %cst_130 = arith.constant dense<0.000000e+00> : vector<8xf32>
    %236 = vector.multi_reduction <add>, %235, %cst_130 [1] : vector<8x16xf32> to vector<8xf32>
    %237 = vector.shape_cast %236 : vector<8xf32> to vector<8x1xf32>
    %238 = tpu.reciprocal %237 {approx = true} : vector<8x1xf32> -> vector<8x1xf32>
    %239 = vector.broadcast %238 : vector<8x1xf32> to vector<8x16xf32>
    %240 = arith.mulf %235, %239 : vector<8x16xf32>
    %cst_131 = arith.constant dense<0.000000e+00> : vector<8x8xf32>
    %241 = tpu.matmul %240, %227, %cst_131 {dimension_numbers = #tpu.dot_dimension_numbers<[1], [0], [0], [1], [0, 0, 1, 1], [], []>} : vector<8x16xf32>, vector<16x8xf32>, vector<8x8xf32> -> vector<8x8xf32>
    %c2_132 = arith.constant 2 : index
    %c0_133 = arith.constant 0 : index
    %c0_134 = arith.constant 0 : index
    %242 = vector.load %arg27[%c2_132, %c0_133, %c0_134] : memref<4x8x32xf32, #tpu.memory_space<vmem>>, vector<1x8x32xf32>
    %243 = vector.shape_cast %242 : vector<1x8x32xf32> to vector<8x32xf32>
    %cst_135 = arith.constant dense<0.000000e+00> : vector<8x32xf32>
    %244 = tpu.matmul %241, %243, %cst_135 {dimension_numbers = #tpu.dot_dimension_numbers<[1], [0], [0], [1], [0, 0, 1, 1], [], []>} : vector<8x8xf32>, vector<8x32xf32>, vector<8x32xf32> -> vector<8x32xf32>
    %245 = arith.addf %224, %244 : vector<8x32xf32>
    %246 = vector.extract_strided_slice %171 {offsets = [0, 24], sizes = [8, 8], strides = [1, 1]} : vector<8x32xf32> to vector<8x8xf32>
    %247 = vector.extract_strided_slice %176 {offsets = [0, 24], sizes = [16, 8], strides = [1, 1]} : vector<16x32xf32> to vector<16x8xf32>
    %248 = vector.extract_strided_slice %181 {offsets = [0, 24], sizes = [16, 8], strides = [1, 1]} : vector<16x32xf32> to vector<16x8xf32>
    %cst_136 = arith.constant 0.353553385 : f32
    %249 = vector.broadcast %cst_136 : f32 to vector<8x8xf32>
    %250 = arith.mulf %246, %249 : vector<8x8xf32>
    %cst_137 = arith.constant dense<0.000000e+00> : vector<8x16xf32>
    %251 = tpu.matmul %250, %247, %cst_137 {dimension_numbers = #tpu.dot_dimension_numbers<[1], [1], [0], [0], [0, 0, 1, 0], [], []>} : vector<8x8xf32>, vector<16x8xf32>, vector<8x16xf32> -> vector<8x16xf32>
    %cst_138 = arith.constant dense<0xFF800000> : vector<8xf32>
    %252 = vector.multi_reduction <maximumf>, %251, %cst_138 [1] : vector<8x16xf32> to vector<8xf32>
    %253 = vector.shape_cast %252 : vector<8xf32> to vector<8x1xf32>
    %254 = vector.broadcast %253 : vector<8x1xf32> to vector<8x16xf32>
    %255 = arith.subf %251, %254 : vector<8x16xf32>
    %256 = math.exp %255 : vector<8x16xf32>
    %cst_139 = arith.constant dense<0.000000e+00> : vector<8xf32>
    %257 = vector.multi_reduction <add>, %256, %cst_139 [1] : vector<8x16xf32> to vector<8xf32>
    %258 = vector.shape_cast %257 : vector<8xf32> to vector<8x1xf32>
    %259 = tpu.reciprocal %258 {approx = true} : vector<8x1xf32> -> vector<8x1xf32>
    %260 = vector.broadcast %259 : vector<8x1xf32> to vector<8x16xf32>
    %261 = arith.mulf %256, %260 : vector<8x16xf32>
    %cst_140 = arith.constant dense<0.000000e+00> : vector<8x8xf32>
    %262 = tpu.matmul %261, %248, %cst_140 {dimension_numbers = #tpu.dot_dimension_numbers<[1], [0], [0], [1], [0, 0, 1, 1], [], []>} : vector<8x16xf32>, vector<16x8xf32>, vector<8x8xf32> -> vector<8x8xf32>
    %c3_141 = arith.constant 3 : index
    %c0_142 = arith.constant 0 : index
    %c0_143 = arith.constant 0 : index
    %263 = vector.load %arg27[%c3_141, %c0_142, %c0_143] : memref<4x8x32xf32, #tpu.memory_space<vmem>>, vector<1x8x32xf32>
    %264 = vector.shape_cast %263 : vector<1x8x32xf32> to vector<8x32xf32>
    %cst_144 = arith.constant dense<0.000000e+00> : vector<8x32xf32>
    %265 = tpu.matmul %262, %264, %cst_144 {dimension_numbers = #tpu.dot_dimension_numbers<[1], [0], [0], [1], [0, 0, 1, 1], [], []>} : vector<8x8xf32>, vector<8x32xf32>, vector<8x32xf32> -> vector<8x32xf32>
    %266 = arith.addf %245, %265 : vector<8x32xf32>
    %c0_145 = arith.constant 0 : index
    %c0_146 = arith.constant 0 : index
    %267 = vector.load %arg28[%c0_145, %c0_146] : memref<1x32xf32, #tpu.memory_space<vmem>>, vector<1x32xf32>
    %268 = vector.broadcast %267 : vector<1x32xf32> to vector<8x32xf32>
    %269 = arith.addf %266, %268 : vector<8x32xf32>
    %cst_147 = arith.constant dense<0.000000e+00> : vector<32xf32>
    %270 = vector.multi_reduction <add>, %269, %cst_147 [0] : vector<8x32xf32> to vector<32xf32>
    %271 = vector.shape_cast %270 : vector<32xf32> to vector<1x32xf32>
    %cst_148 = arith.constant 8.000000e+00 : f32
    %272 = vector.broadcast %cst_148 : f32 to vector<1x32xf32>
    %273 = arith.divf %271, %272 : vector<1x32xf32>
    %c0_149 = arith.constant 0 : index
    %c0_150 = arith.constant 0 : index
    %c0_151 = arith.constant 0 : index
    %274 = vector.load %arg29[%c0_149, %c0_150, %c0_151] : memref<1x1x32xf32, #tpu.memory_space<vmem>>, vector<1x1x32xf32>
    %275 = vector.shape_cast %274 : vector<1x1x32xf32> to vector<1x32xf32>
    %276 = vector.shape_cast %273 : vector<1x32xf32> to vector<1x1x32xf32>
    tpu.vector_store %arg29[%c0_149, %c0_150, %c0_151], %276 {strides = array<i32>} : memref<1x1x32xf32, #tpu.memory_space<vmem>>, vector<1x1x32xf32>,
    return
  }
  func.func @transform_0(%arg0: i32) -> (i32, i32, i32) {
    %c0_i32 = arith.constant 0 : i32
    %c0_i32_0 = arith.constant 0 : i32
    %c0_i32_1 = arith.constant 0 : i32
    return %arg0, %c0_i32, %c0_i32_0 : i32, i32, i32
  }
  func.func @transform_1(%arg0: i32) -> (i32, i32, i32) {
    %c0_i32 = arith.constant 0 : i32
    %c0_i32_0 = arith.constant 0 : i32
    %c0_i32_1 = arith.constant 0 : i32
    return %arg0, %c0_i32, %c0_i32_0 : i32, i32, i32
  }
  func.func @transform_2(%arg0: i32) -> (i32, i32, i32) {
    %c0_i32 = arith.constant 0 : i32
    %c0_i32_0 = arith.constant 0 : i32
    %c0_i32_1 = arith.constant 0 : i32
    return %arg0, %c0_i32, %c0_i32_0 : i32, i32, i32
  }
  func.func @transform_3(%arg0: i32) -> (i32, i32) {
    %c0_i32 = arith.constant 0 : i32
    %c0_i32_0 = arith.constant 0 : i32
    %c0_i32_1 = arith.constant 0 : i32
    return %c0_i32, %c0_i32_0 : i32, i32
  }
  func.func @transform_4(%arg0: i32) -> (i32, i32) {
    %c0_i32 = arith.constant 0 : i32
    %c0_i32_0 = arith.constant 0 : i32
    %c0_i32_1 = arith.constant 0 : i32
    return %c0_i32, %c0_i32_0 : i32, i32
  }
  func.func @transform_5(%arg0: i32) -> (i32, i32) {
    %c0_i32 = arith.constant 0 : i32
    %c0_i32_0 = arith.constant 0 : i32
    %c0_i32_1 = arith.constant 0 : i32
    return %c0_i32, %c0_i32_0 : i32, i32
  }
  func.func @transform_6(%arg0: i32) -> (i32, i32) {
    %c0_i32 = arith.constant 0 : i32
    %c0_i32_0 = arith.constant 0 : i32
    %c0_i32_1 = arith.constant 0 : i32
    return %c0_i32, %c0_i32_0 : i32, i32
  }
  func.func @transform_7(%arg0: i32) -> (i32, i32) {
    %c0_i32 = arith.constant 0 : i32
    %c0_i32_0 = arith.constant 0 : i32
    %c0_i32_1 = arith.constant 0 : i32
    return %c0_i32, %c0_i32_0 : i32, i32
  }
  func.func @transform_8(%arg0: i32) -> (i32, i32) {
    %c0_i32 = arith.constant 0 : i32
    %c0_i32_0 = arith.constant 0 : i32
    %c0_i32_1 = arith.constant 0 : i32
    return %c0_i32, %c0_i32_0 : i32, i32
  }
  func.func @transform_9(%arg0: i32) -> (i32, i32) {
    %c0_i32 = arith.constant 0 : i32
    %c0_i32_0 = arith.constant 0 : i32
    %c0_i32_1 = arith.constant 0 : i32
    return %c0_i32, %c0_i32_0 : i32, i32
  }
  func.func @transform_10(%arg0: i32) -> (i32, i32) {
    %c0_i32 = arith.constant 0 : i32
    %c0_i32_0 = arith.constant 0 : i32
    %c0_i32_1 = arith.constant 0 : i32
    return %c0_i32, %c0_i32_0 : i32, i32
  }
  func.func @transform_11(%arg0: i32) -> (i32, i32) {
    %c0_i32 = arith.constant 0 : i32
    %c0_i32_0 = arith.constant 0 : i32
    %c0_i32_1 = arith.constant 0 : i32
    return %c0_i32, %c0_i32_0 : i32, i32
  }
  func.func @transform_12(%arg0: i32) -> (i32, i32) {
    %c0_i32 = arith.constant 0 : i32
    %c0_i32_0 = arith.constant 0 : i32
    %c0_i32_1 = arith.constant 0 : i32
    return %c0_i32, %c0_i32_0 : i32, i32
  }
  func.func @transform_13(%arg0: i32) -> (i32, i32) {
    %c0_i32 = arith.constant 0 : i32
    %c0_i32_0 = arith.constant 0 : i32
    %c0_i32_1 = arith.constant 0 : i32
    return %c0_i32, %c0_i32_0 : i32, i32
  }
  func.func @transform_14(%arg0: i32) -> (i32, i32) {
    %c0_i32 = arith.constant 0 : i32
    %c0_i32_0 = arith.constant 0 : i32
    %c0_i32_1 = arith.constant 0 : i32
    return %c0_i32, %c0_i32_0 : i32, i32
  }
  func.func @transform_15(%arg0: i32) -> (i32, i32) {
    %c0_i32 = arith.constant 0 : i32
    %c0_i32_0 = arith.constant 0 : i32
    %c0_i32_1 = arith.constant 0 : i32
    return %c0_i32, %c0_i32_0 : i32, i32
  }
  func.func @transform_16(%arg0: i32) -> (i32, i32) {
    %c0_i32 = arith.constant 0 : i32
    %c0_i32_0 = arith.constant 0 : i32
    %c0_i32_1 = arith.constant 0 : i32
    return %c0_i32, %c0_i32_0 : i32, i32
  }
  func.func @transform_17(%arg0: i32) -> (i32, i32) {
    %c0_i32 = arith.constant 0 : i32
    %c0_i32_0 = arith.constant 0 : i32
    %c0_i32_1 = arith.constant 0 : i32
    return %c0_i32, %c0_i32_0 : i32, i32
  }
  func.func @transform_18(%arg0: i32) -> (i32, i32, i32) {
    %c0_i32 = arith.constant 0 : i32
    %c0_i32_0 = arith.constant 0 : i32
    %c0_i32_1 = arith.constant 0 : i32
    %c0_i32_2 = arith.constant 0 : i32
    return %c0_i32, %c0_i32_0, %c0_i32_1 : i32, i32, i32
  }
  func.func @transform_19(%arg0: i32) -> (i32, i32) {
    %c0_i32 = arith.constant 0 : i32
    %c0_i32_0 = arith.constant 0 : i32
    %c0_i32_1 = arith.constant 0 : i32
    return %c0_i32, %c0_i32_0 : i32, i32
  }
  func.func @transform_20(%arg0: i32) -> (i32, i32) {
    %c0_i32 = arith.constant 0 : i32
    %c0_i32_0 = arith.constant 0 : i32
    %c0_i32_1 = arith.constant 0 : i32
    return %c0_i32, %c0_i32_0 : i32, i32
  }
  func.func @transform_21(%arg0: i32) -> (i32, i32) {
    %c0_i32 = arith.constant 0 : i32
    %c0_i32_0 = arith.constant 0 : i32
    %c0_i32_1 = arith.constant 0 : i32
    return %c0_i32, %c0_i32_0 : i32, i32
  }
  func.func @transform_22(%arg0: i32) -> (i32, i32) {
    %c0_i32 = arith.constant 0 : i32
    %c0_i32_0 = arith.constant 0 : i32
    %c0_i32_1 = arith.constant 0 : i32
    return %c0_i32, %c0_i32_0 : i32, i32
  }
  func.func @transform_23(%arg0: i32) -> (i32, i32) {
    %c0_i32 = arith.constant 0 : i32
    %c0_i32_0 = arith.constant 0 : i32
    %c0_i32_1 = arith.constant 0 : i32
    return %c0_i32, %c0_i32_0 : i32, i32
  }
  func.func @transform_24(%arg0: i32) -> (i32, i32) {
    %c0_i32 = arith.constant 0 : i32
    %c0_i32_0 = arith.constant 0 : i32
    %c0_i32_1 = arith.constant 0 : i32
    return %c0_i32, %c0_i32_0 : i32, i32
  }
  func.func @transform_25(%arg0: i32) -> (i32, i32) {
    %c0_i32 = arith.constant 0 : i32
    %c0_i32_0 = arith.constant 0 : i32
    %c0_i32_1 = arith.constant 0 : i32
    return %c0_i32, %c0_i32_0 : i32, i32
  }
  func.func @transform_26(%arg0: i32) -> (i32, i32, i32) {
    %c0_i32 = arith.constant 0 : i32
    %c0_i32_0 = arith.constant 0 : i32
    %c0_i32_1 = arith.constant 0 : i32
    %c0_i32_2 = arith.constant 0 : i32
    return %c0_i32, %c0_i32_0, %c0_i32_1 : i32, i32, i32
  }
  func.func @transform_27(%arg0: i32) -> (i32, i32) {
    %c0_i32 = arith.constant 0 : i32
    %c0_i32_0 = arith.constant 0 : i32
    %c0_i32_1 = arith.constant 0 : i32
    return %c0_i32, %c0_i32_0 : i32, i32
  }
  func.func @transform_28(%arg0: i32) -> (i32, i32, i32) {
    %c0_i32 = arith.constant 0 : i32
    %c0_i32_0 = arith.constant 0 : i32
    %c0_i32_1 = arith.constant 0 : i32
    return %arg0, %c0_i32, %c0_i32_0 : i32, i32, i32
  }
}

</mosaic_0001>

<bundles_post_ra>
// kernel: data_interaction_encoder.1
= control target key start
LH: loop header
LB: loop body
LE: loop exit
PB: predicated region body
PF: predicated region fallthrough
CT: control target
= control target key end

     0   :  { %s6205_s0 = inlined_call_operand.vmem [shape: f32[2,16,4], index: 0, kind: input, shape index: {}]   ;;  %s6206_s1 = inlined_call_operand.vmem [shape: f32[2,16,4], index: 1, kind: input, shape index: {}]   ;;  %s6207_s2 = inlined_call_operand.vmem [shape: f32[2,8,4], index: 2, kind: input, shape index: {}]   ;;  %s6208_s3 = inlined_call_operand.vmem [shape: f32[4,32], index: 3, kind: input, shape index: {}]   ;;  %s6209_s4 = inlined_call_operand.vmem [shape: f32[4,32], index: 4, kind: input, shape index: {}]   ;;  %s6210_s5 = inlined_call_operand.vmem [shape: f32[1,32], index: 5, kind: input, shape index: {}]   ;;  %s6211_s6 = inlined_call_operand.vmem [shape: f32[32,32], index: 6, kind: input, shape index: {}]   ;;  %s6212_s7 = inlined_call_operand.vmem [shape: f32[1,32], index: 7, kind: input, shape index: {}]   ;;  %s6213_s8 = inlined_call_operand.vmem [shape: f32[32,32], index: 8, kind: input, shape index: {}]   ;;  %s6214_s9 = inlined_call_operand.vmem [shape: f32[1,32], index: 9, kind: input, shape index: {}]   ;;  %s6215_s10 = inlined_call_operand.vmem [shape: f32[4,32], index: 10, kind: input, shape index: {}]   ;;  %s6216_s11 = inlined_call_operand.vmem [shape: f32[1,32], index: 11, kind: input, shape index: {}]   ;;  %s6217_s12 = inlined_call_operand.vmem [shape: f32[32,32], index: 12, kind: input, shape index: {}]   ;;  %s6218_s13 = inlined_call_operand.vmem [shape: f32[1,32], index: 13, kind: input, shape index: {}]   ;;  %s6219_s14 = inlined_call_operand.vmem [shape: f32[32,32], index: 14, kind: input, shape index: {}]   ;;  %s6220_s15 = inlined_call_operand.vmem [shape: f32[1,32], index: 15, kind: input, shape index: {}]   ;;  %s6221_s16 = inlined_call_operand.vmem [shape: f32[32,96], index: 16, kind: input, shape index: {}]   ;;  %s6222_s17 = inlined_call_operand.vmem [shape: f32[1,96], index: 17, kind: input, shape index: {}]   ;;  %s6223_s18 = inlined_call_operand.vmem [shape: f32[4,8,32], index: 18, kind: input, shape index: {}]   ;;  %s6224_s19 = inlined_call_operand.vmem [shape: f32[1,32], index: 19, kind: input, shape index: {}]   ;;  %s6225_s20 = inlined_call_operand.vmem [shape: f32[32,32], index: 20, kind: input, shape index: {}]   ;;  %s6226_s21 = inlined_call_operand.hbm [shape: f32[1,32], index: 21, kind: input, shape index: {}]   ;;  %s6227_s22 = inlined_call_operand.hbm [shape: f32[32,32], index: 22, kind: input, shape index: {}]   ;;  %s6228_s23 = inlined_call_operand.hbm [shape: f32[1,32], index: 23, kind: input, shape index: {}]   ;;  %s6229_s24 = inlined_call_operand.hbm [shape: f32[32,32], index: 24, kind: input, shape index: {}]   ;;  %s6230_s25 = inlined_call_operand.hbm [shape: f32[1,32], index: 25, kind: input, shape index: {}]   ;;  %s6231_s26 = inlined_call_operand.vmem [shape: f32[4,8,32], index: 26, kind: input, shape index: {}]   ;;  %s6232_s27 = inlined_call_operand.hbm [shape: f32[1,32], index: 27, kind: input, shape index: {}]   ;;  %s6233_s28 = inlined_call_operand.hbm [shape: f32[2,1,32], index: 28, kind: output, shape index: {}]  }
   0x1   :  { %6251 = sst [smem:[#allocation27_spill]] %s6205_s0 }
   0x2   :  { %6252 = sst [smem:[#allocation28_spill]] %s6206_s1 }
   0x3   :  { %6253 = sst [smem:[#allocation29_spill]] %s6207_s2 }
   0x4   :  { %6254 = sst [smem:[#allocation30_spill]] %s6208_s3 }
   0x5   :  { %6255 = sst [smem:[#allocation31_spill]] %s6209_s4 }
   0x6   :  { %6256 = sst [smem:[#allocation32_spill]] %s6210_s5 }
   0x7   :  { %6257 = sst [smem:[#allocation33_spill]] %s6211_s6 }
   0x8   :  { %6258 = sst [smem:[#allocation34_spill]] %s6212_s7 }
   0x9   :  { %6259 = sst [smem:[#allocation35_spill]] %s6213_s8 }
   0xa   :  { %6260 = sst [smem:[#allocation36_spill]] %s6214_s9 }
   0xb   :  { %6261 = sst [smem:[#allocation37_spill]] %s6215_s10 }
   0xc   :  { %6262 = sst [smem:[#allocation38_spill]] %s6216_s11 }
   0xd   :  { %6263 = sst [smem:[#allocation39_spill]] %s6217_s12 }
   0xe   :  { %6264 = sst [smem:[#allocation40_spill]] %s6224_s19 }
   0xf   :  { %6265 = sst [smem:[#allocation41_spill]] %s6231_s26 }
  0x10   :  { %6266 = sst [smem:[#allocation42_spill]] %s6233_s28 }
  0x11   :  { %33 = vsyncpa [#allocation3], 0 }
  0x12   :  { %34 = vsyncpa [#allocation6], 0 }
  0x13   :  { %35 = vsyncpa [#allocation9], 0 }
  0x14   :  { %36 = vsyncpa [#allocation12], 0 }
  0x15   :  { %37 = vsyncpa [#allocation4], 0 }
  0x16   :  { %39 = vsyncpa [#allocation4 + $0x1], 0  ;;  %s5566_s8 = smov 0   ;;  %s5568_s5 = smov 0  }
  0x17   :  { %s5570_s9 = smov 0   ;;  %s5572_s30 = smov 0  }
  0x18 LB: > { %6267 = sst [smem:[#allocation19_spill]] %s5384_s8  ;;  %s5587_s3 = sadd.s32 4294967295, %s5396_s30   ;;  %s5396_s30 = sphi %s5572_s30, %s6315_s30   ;;  %s5392_s9 = sphi %s5570_s9, %s6318_s9   ;;  %s5388_s5 = sphi %s5568_s5, %s6317_s5   ;;  %s5384_s8 = sphi %s5566_s8, %s6316_s8  }
  0x19   : > { %6268 = sst [smem:[#allocation20_spill]] %s5388_s5  ;;  %s4269_s6 = sadd.s32 4294967294, %s5396_s30  }
  0x1a   : > { %6269 = sst [smem:[#allocation21_spill]] %s5392_s9  ;;  %s5591_s10 = sadd.s32 1, %s5396_s30  }
  0x1b   : > { %6270 = sst [smem:[#allocation22_spill]] %s5396_s30  ;;  %s655_s0 = sadd.s32 1, %s5392_s9 }
  0x1c   : > { %6271 = sst [smem:[#allocation23_spill]] %s5591_s10  ;;  %s652_s11 = ssub.s32 %s5396_s30, %s5591_s10 }
  0x1d   : > { %p665_p0 = scmp.ne.s32.totalorder %s5392_s9, %s5388_s5  ;;  %p653_p1 = scmp.eq.s32.totalorder %s652_s11, 0 }
  0x1e   : > { %p666_p2 = scmp.eq.s32.totalorder %s5587_s3, 1  ;;  %p671_p3 = scmp.ne.s32.totalorder %s5388_s5, %s5384_s8 }
  0x1f   : > { %p672_p4 = scmp.eq.s32.totalorder %s4269_s6, 1  ;;  %p4270_p7 = scmp.ge.s32.totalorder %s5396_s30, 1 }
  0x20   : > { %s5602_s29 = scalar_select %p653_p1, %s5392_s9, %s655_s0  }
  0x21   : > { %p5604_p5 = por %p666_p2, %p665_p0  ;;  %p5608_p6 = por %p672_p4, %p671_p3 }
  0x22   : > { %6272 = sst [smem:[#allocation24_spill]] %s5602_s29  ;;  %p679_p8 = scmp.lt.s32.totalorder %s5396_s30, 3 }
  0x23   : > { %s6273_s2 = scalar_select %p5604_p5, 1, 0 }
  0x24   : > { %s6275_s7 = scalar_select %p5608_p6, 1, 0 }
  0x25   : > { %6274 = sst [smem:[#allocation25_spill]] %s6273_s2  ;;  %p6244_p9 = scmp.eq.s32.totalorder %s5587_s3, 0 }
  0x26   : > { %6276 = sst [smem:[#allocation26_spill]] %s6275_s7  ;;  %p5615_p10 = pnand %p4270_p7, %p679_p8 }
  0x27   : > { %s5398_s1 = smov [#allocation5]   ;;  %s5399_s0 = smov [#allocation8]  }
  0x28   : > { %s6277_s12 = scalar_select %p5615_p10, 1, 0 }
  0x29   : > { %s756_s4 = sshll.u32 %s5398_s1, 4  ;;  %p4930_p11 = pneg %p5615_p10  ;;  %s5621_s4 = int_to_ptr.vmem [resolvable:$true] %s756_s4 }
  0x2a   : > { %s780_s11 = sshll.u32 %s5399_s0, 4  ;;  %s5400_s29 = smov [#allocation2]   ;;  %s5629_s11 = int_to_ptr.vmem [resolvable:$true] %s780_s11 }
  0x2b   : > { %p5625_p12 = pnand %p6244_p9, %p4930_p11  ;;  %s5631_s9 = sshll.u32 %s5400_s29, 4  ;;  %s747_s9 = int_to_ptr.vmem [resolvable:$true] %s5631_s9 }
  0x2c   : > { %s5150_s1 = scalar_lea.hbm %s6227_s22, 512 }
  0x2d   : > { %p5151_p13 = scmp.ne.s32.totalorder %s6227_s22, %s5150_s1  ;;  %p5641_p0 = pneg %p5625_p12 }
  0x2e   : > { %p5157_p3 = scmp.lt.u32.totalorder %s5150_s1, %s6227_s22 }
  0x2f   : > { %p5153_p1 = pnand %p5641_p0, %p5151_p13 }
  0x31   : > { %p5154_p2 = pneg %p5153_p1 }
  0x33   : > { %p5159_p4 = pnand %p5157_p3, %p5154_p2 }
  0x35   : > { %5162 = shalt.err (!%p5159_p4)
}
  0x36   : > { %s5163_s8 = scalar_lea.vmem %s5621_s4, 512  ;;  %p5171_p9 = scmp.lt.s32.totalorder %s5621_s4, %s5621_s4 }
  0x37   : > { %p5164_p7 = scmp.ne.s32.totalorder %s5621_s4, %s5163_s8  ;;  %p5172_p6 = scmp.lt.s32.totalorder %s5163_s8, %s5163_s8 }
  0x39   : > { %p5166_p8 = pnand %p5164_p7, %p5641_p0  ;;  %p5173_p13 = por %p5172_p6, %p5171_p9 }
  0x3b   : > { %p5167_p11 = pneg %p5166_p8 }
  0x3d   : > { %p5174_p1 = pnand %p5173_p13, %p5167_p11 }
  0x3f   : > { %5177 = shalt.err (!%p5174_p1)
}
  0x40   : > { %s5401_s30 = smov 128   ;;  %s5402_s10 = smov 8  }
  0x41   : > { %4936 = dma.hbm_to_vmem [thread:$0]  (!%p5625_p12), %s6227_s22, 512, %s5621_s4, [#allocation6], %s5401_s30, %s5401_s30, %s5402_s10  }
  0x42   : > { %s5178_s2 = scalar_lea.hbm %s6229_s24, 512 }
  0x43   : > { %p5179_p6 = scmp.ne.s32.totalorder %s6229_s24, %s5178_s2  ;;  %p5185_p3 = scmp.lt.u32.totalorder %s5178_s2, %s6229_s24 }
  0x45   : > { %p5181_p9 = pnand %p5179_p6, %p5641_p0 }
  0x47   : > { %p5182_p2 = pneg %p5181_p9 }
  0x49   : > { %p5187_p4 = pnand %p5185_p3, %p5182_p2 }
  0x4b   : > { %5190 = shalt.err (!%p5187_p4)
}
  0x4c   : > { %s5191_s4 = scalar_lea.vmem %s5629_s11, 512  ;;  %p5199_p13 = scmp.lt.s32.totalorder %s5629_s11, %s5629_s11 }
  0x4d   : > { %p5192_p7 = scmp.ne.s32.totalorder %s5629_s11, %s5191_s4  ;;  %p5200_p1 = scmp.lt.s32.totalorder %s5191_s4, %s5191_s4 }
  0x4f   : > { %p5194_p8 = pnand %p5192_p7, %p5641_p0  ;;  %p5201_p6 = por %p5200_p1, %p5199_p13 }
  0x51   : > { %p5195_p11 = pneg %p5194_p8 }
  0x53   : > { %p5202_p9 = pnand %p5201_p6, %p5195_p11 }
  0x55   : > { %5205 = shalt.err (!%p5202_p9)
}
  0x56   : > { %4942 = dma.hbm_to_vmem [thread:$0]  (!%p5625_p12), %s6229_s24, 512, %s5629_s11, [#allocation9], %s5401_s30, %s5401_s30, %s5402_s10  }
  0x57   : > { %s5206_s7 = scalar_lea.hbm %s6226_s21, 16 }
  0x58   : > { %p5207_p2 = scmp.ne.s32.totalorder %s6226_s21, %s5206_s7  ;;  %p5213_p7 = scmp.lt.u32.totalorder %s5206_s7, %s6226_s21 }
  0x5a   : > { %p5209_p3 = pnand %p5207_p2, %p5641_p0 }
  0x5c   : > { %p5210_p4 = pneg %p5209_p3 }
  0x5e   : > { %p5215_p8 = pnand %p5213_p7, %p5210_p4 }
  0x60   : > { %5218 = shalt.err (!%p5215_p8)
}
  0x61   : > { %s5219_s4 = scalar_lea.vmem %s747_s9, 16  ;;  %s5226_s11 = scalar_lea.vmem %s747_s9, 32 }
  0x62   : > { %p5220_p11 = scmp.ne.s32.totalorder %s747_s9, %s5219_s4  ;;  %p5227_p6 = scmp.lt.s32.totalorder %s747_s9, %s747_s9 }
  0x63   : > { %p5228_p9 = scmp.lt.s32.totalorder %s5226_s11, %s5219_s4 }
  0x64   : > { %p5222_p13 = pnand %p5220_p11, %p5641_p0 }
  0x65   : > { %p5229_p5 = por %p5228_p9, %p5227_p6 }
  0x66   : > { %p5223_p1 = pneg %p5222_p13 }
  0x68   : > { %p5230_p10 = pnand %p5229_p5, %p5223_p1 }
  0x6a   : > { %5233 = shalt.err (!%p5230_p10)
}
  0x6b   : > { %4933 = dma.hbm_to_vmem [thread:$0]  (!%p5625_p12), %s6226_s21, 16, %s747_s9, [#allocation3]  }
  0x6c   : > { %s5403_s19 = smov [#allocation7]   ;;  %s5404_s5 = smov [#allocation10]  }
  0x6d   : > { %s770_s26 = sshll.u32 %s5403_s19, 4  ;;  %s794_s2 = sshll.u32 %s5404_s5, 4  ;;  %s771_s26 = int_to_ptr.vmem [resolvable:$true] %s770_s26  ;;  %s795_s2 = int_to_ptr.vmem [resolvable:$true] %s794_s2 }
  0x6e   : > { %s5234_s0 = scalar_lea.hbm %s6228_s23, 16 }
  0x6f   : > { %p5235_p5 = scmp.ne.s32.totalorder %s6228_s23, %s5234_s0  ;;  %p5241_p3 = scmp.lt.u32.totalorder %s5234_s0, %s6228_s23 }
  0x71   : > { %p5237_p10 = pnand %p5235_p5, %p5641_p0 }
  0x73   : > { %p5238_p2 = pneg %p5237_p10 }
  0x75   : > { %p5243_p4 = pnand %p5241_p3, %p5238_p2 }
  0x77   : > { %5246 = shalt.err (!%p5243_p4)
}
  0x78   : > { %s5247_s9 = scalar_lea.vmem %s771_s26, 16  ;;  %s5254_s30 = scalar_lea.vmem %s771_s26, 32 }
  0x79   : > { %p5248_p7 = scmp.ne.s32.totalorder %s771_s26, %s5247_s9  ;;  %p5255_p13 = scmp.lt.s32.totalorder %s771_s26, %s771_s26 }
  0x7a   : > { %p5256_p1 = scmp.lt.s32.totalorder %s5254_s30, %s5247_s9 }
  0x7b   : > { %p5250_p8 = pnand %p5248_p7, %p5641_p0 }
  0x7c   : > { %p5257_p6 = por %p5256_p1, %p5255_p13 }
  0x7d   : > { %p5251_p11 = pneg %p5250_p8 }
  0x7f   : > { %p5258_p9 = pnand %p5257_p6, %p5251_p11 }
  0x81   : > { %5261 = shalt.err (!%p5258_p9)
}
  0x82   : > { %4939 = dma.hbm_to_vmem [thread:$0]  (!%p5625_p12), %s6228_s23, 16, %s771_s26, [#allocation6]  }
  0x83   : > { %s5262_s1 = scalar_lea.hbm %s6230_s25, 16 }
  0x84   : > { %p5263_p5 = scmp.ne.s32.totalorder %s6230_s25, %s5262_s1  ;;  %p5269_p3 = scmp.lt.u32.totalorder %s5262_s1, %s6230_s25 }
  0x86   : > { %p5265_p10 = pnand %p5263_p5, %p5641_p0 }
  0x88   : > { %p5266_p2 = pneg %p5265_p10 }
  0x8a   : > { %p5271_p4 = pnand %p5269_p3, %p5266_p2 }
  0x8c   : > { %5274 = shalt.err (!%p5271_p4)
}
  0x8d   : > { %s5275_s11 = scalar_lea.vmem %s795_s2, 16  ;;  %s5282_s26 = scalar_lea.vmem %s795_s2, 32 }
  0x8e   : > { %p5276_p7 = scmp.ne.s32.totalorder %s795_s2, %s5275_s11  ;;  %p5283_p13 = scmp.lt.s32.totalorder %s795_s2, %s795_s2 }
  0x8f   : > { %p5284_p1 = scmp.lt.s32.totalorder %s5282_s26, %s5275_s11 }
  0x90   : > { %p5278_p8 = pnand %p5276_p7, %p5641_p0 }
  0x91   : > { %p5285_p6 = por %p5284_p1, %p5283_p13 }
  0x92   : > { %p5279_p11 = pneg %p5278_p8 }
  0x94   : > { %p5286_p9 = pnand %p5285_p6, %p5279_p11 }
  0x96   : > { %5289 = shalt.err (!%p5286_p9)
}
  0x97   : > { %4945 = dma.hbm_to_vmem [thread:$0]  (!%p5625_p12), %s6230_s25, 16, %s795_s2, [#allocation9]  }
  0x98   : > { %s5405_s10 = smov [#allocation11]   ;;  %s5290_s1 = scalar_lea.hbm %s6232_s27, 16 }
  0x99   : > { %s808_s19 = sshll.u32 %s5405_s10, 4  ;;  %p5291_p5 = scmp.ne.s32.totalorder %s6232_s27, %s5290_s1  ;;  %s809_s19 = int_to_ptr.vmem [resolvable:$true] %s808_s19 }
  0x9a   : > { %p5297_p3 = scmp.lt.u32.totalorder %s5290_s1, %s6232_s27 }
  0x9b   : > { %p5293_p10 = pnand %p5291_p5, %p5641_p0 }
  0x9d   : > { %p5294_p2 = pneg %p5293_p10 }
  0x9f   : > { %p5299_p4 = pnand %p5297_p3, %p5294_p2 }
  0xa1   : > { %5302 = shalt.err (!%p5299_p4)
}
  0xa2   : > { %s5303_s2 = scalar_lea.vmem %s809_s19, 16  ;;  %s5310_s11 = scalar_lea.vmem %s809_s19, 32 }
  0xa3   : > { %p5304_p7 = scmp.ne.s32.totalorder %s809_s19, %s5303_s2  ;;  %p5311_p13 = scmp.lt.s32.totalorder %s809_s19, %s809_s19 }
  0xa4   : > { %p5312_p1 = scmp.lt.s32.totalorder %s5310_s11, %s5303_s2 }
  0xa5   : > { %p5306_p8 = pnand %p5304_p7, %p5641_p0 }
  0xa6   : > { %p5313_p6 = por %p5312_p1, %p5311_p13 }
  0xa7   : > { %p5307_p11 = pneg %p5306_p8 }
  0xa9   : > { %p5314_p9 = pnand %p5313_p6, %p5307_p11 }
  0xab   : > { %5317 = shalt.err (!%p5314_p9)
}
  0xac   : > { %4948 = dma.hbm_to_vmem [thread:$0]  (!%p5625_p12), %s6232_s27, 16, %s809_s19, [#allocation12]  }
  0xad   : > { %p6280_p5 = scmp.ne.s32.totalorder %s6277_s12, 0 }
  0xae   : > { %p6281_p10 = scmp.eq.s32.totalorder (!%p6280_p5), %s5587_s3, 0 }
  0xaf   : > { %844 = sbr.rel (%p6280_p5) target bundleno = 5234 (0x1472), region = 132 }
  0xb6   : > { %5363 = dma.done.wait (%p6281_p10), [#allocation3], 16   ;;  %p6282_p0 = pmov %p6281_p10 }
  0xb8   : > { %5365 = vsyncadd (%p6282_p0), [#allocation3], 4294967280  ;;  %p6283_p2 = pmov %p6282_p0 }
  0xb9   : > { %p6284_p3 = pmov %p6282_p0 }
  0xba   : > { %5367 = dma.done.wait (%p6283_p2), [#allocation6], 528  }
  0xbb   : > { %5369 = vsyncadd (%p6284_p3), [#allocation6], 4294966768  ;;  %p6285_p4 = pmov %p6282_p0 }
  0xbc   : > { %p6286_p12 = pmov %p6282_p0 }
  0xbd   : > { %5371 = dma.done.wait (%p6285_p4), [#allocation9], 528  }
  0xbe   : > { %5373 = vsyncadd (%p6286_p12), [#allocation9], 4294966768  ;;  %p6287_p7 = pmov %p6282_p0 }
  0xbf   : > { %p6288_p8 = pmov %p6282_p0 }
  0xc0   : > { %5375 = dma.done.wait (%p6287_p7), [#allocation12], 16  }
  0xc1   : > { %5377 = vsyncadd (%p6288_p8), [#allocation12], 4294967280  ;;  %p946_p11 = scmp.lt.s32.totalorder %s5587_s3, 1  ;;  %vm974_vm0 = vcmask 1043456   ;;  %s6289_s10 = sld [smem:[#allocation27_spill]]  ;;  %vm967_vm1 = vcmask 31744  }
  0xc2   : > { %s6290_s1 = sld [smem:[#allocation28_spill]]  ;;  %s6291_s4 = sld [smem:[#allocation31_spill]]  ;;  %v5406_v12 = vmov 0.0   ;;  %vm1167_vm2 = vcmask 261120   ;;  %vm5407_vm3 = vmmov 0   ;;  %v5408_v38 = vmov 0.0|0.0  }
  0xc3   : > { %s5778_s28 = scalar_select %p946_p11, %s5587_s3, 1  ;;  %v1613_v42 = vld [vmem:[%s6221_s16] sm:$0xff]  ;;  %v1614_v43 = vld [vmem:[%s6221_s16 + $0x8] sm:$0xff]  ;;  %vm1713_vm4 = vcmask 64512   ;;  %vm1799_vm6 = vcmask 130048   ;;  %vm4115_vm7 = vcmask 253952  }
  0xc4   : > { %s6292_s26 = sld [smem:[#allocation30_spill]]  ;;  %s6293_s6 = sld [smem:[#allocation33_spill]]  ;;  %v4798_v45 = vpack.c.bf16 %v1614_v43, %v1613_v42  ;;  %vm5936_vm5 = vmpackc.low %vm1713_vm4, %vm1713_vm4 }
  0xc5   : > { %s4384_s12 = sshll.u32 %s5778_s28, 4  ;;  %s6294_s8 = sld [smem:[#allocation32_spill]] }
  0xc6   : > { %s6296_s30 = sld [smem:[#allocation29_spill]]  ;;  %s6297_s7 = sld [smem:[#allocation35_spill]] }
  0xc7   : > { %s950_s19 = scalar_lea.vmem %s6289_s10, %s4384_s12  ;;  %s6299_s2 = sld [smem:[#allocation34_spill]] }
  0xc8   : > { %s955_s0 = scalar_lea.vmem %s6290_s1, %s4384_s12  ;;  %v966_v0 = vld [vmem:[%s6291_s4] sm:$0xf]  ;;  %v961_v5 = vld [vmem:[%s950_s19 + $0x8] sm:$0xff]  ;;  %s4289_s4 = sshll.u32 %s5778_s28, 3 }
  0xc9   : > { %v962_v1 = vld [vmem:[%s955_s0] sm:$0xff]  ;;  %4515 = vmatprep.subr.msk.mxu0 %vm974_vm0, %v966_v0  ;;  %v963_v2 = vld [vmem:[%s955_s0 + $0x8] sm:$0xff]  ;;  %s6300_s12 = sld [smem:[#allocation38_spill]]  ;;  %s5409_s0 = smov 96  }
  0xca   : > { %4517 = vmatprep.mubr.msk.f32.mxu0 %vm967_vm1, %v962_v1  ;;  %v965_v3 = vld [vmem:[%s6292_s26] sm:$0xf]  ;;  %4516 = vmatpush3.msk.msra.mxu0 %vm974_vm0, %v966_v0  ;;  %v1157_v7 = vld [vmem:[%s6293_s6 + $0x8] sm:$0xff]  ;;  %v1158_v9 = vld [vmem:[%s6293_s6 + $0x10] sm:$0xff]  ;;  %s6295_s26 = sld [smem:[#allocation37_spill]]  ;;  %s5411_s29 = smov 88  }
  0xcb   : > { %v960_v4 = vld [vmem:[%s950_s19] sm:$0xff]  ;;  %4518 = vmatmul.mubr.msk.f32.vlgmr.msra.gmra.mrb[0].mxu0 %vm967_vm1, %v963_v2  ;;  %4520 = vmatprep.subr.msk.mxu0 %vm974_vm0, %v965_v3  ;;  %v1159_v10 = vld [vmem:[%s6293_s6 + $0x18] sm:$0xff]  ;;  %s5410_s19 = smov 120   ;;  %s5415_s11 = smov 72  }
  0xcc   : > { %4521 = vmatpush3.msk.msra.mxu0 %vm974_vm0, %v965_v3  ;;  %4522 = vmatprep.mubr.msk.f32.mxu0 %vm967_vm1, %v960_v4  ;;  %v1156_v6 = vld [vmem:[%s6293_s6] sm:$0xff]  ;;  %v4774_v11 = vpack.c.bf16 %v1159_v10, %v1158_v9  ;;  %s959_s10 = scalar_lea.vmem %s6296_s30, %s4289_s4  ;;  %v1260_v31 = vld [vmem:[%s6297_s7 + $0x8] sm:$0xff]  ;;  %v1261_v33 = vld [vmem:[%s6297_s7 + $0x10] sm:$0xff]  ;;  %s6301_s30 = sld [smem:[#allocation36_spill]] }
  0xcd   : > { %v4770_v8 = vpack.c.bf16 %v1157_v7, %v1156_v6  ;;  %v4296_v13 = vld [vmem:[%s6294_s8] ss:$0 sm:$0xff]  ;;  %v1262_v34 = vld [vmem:[%s6297_s7 + $0x18] sm:$0xff]  ;;  %v1615_v6 = vld [vmem:[%s6221_s16 + $0x10] sm:$0xff]  ;;  %s5412_s8 = smov 80   ;;  %s5413_s4 = smov 112  }
  0xce   : > { %v964_v29 = vld [vmem:[%s959_s10] sm:$0xff]  ;;  %v4782_v35 = vpack.c.bf16 %v1262_v34, %v1261_v33  ;;  %v1616_v7 = vld [vmem:[%s6221_s16 + $0x18] sm:$0xff]  ;;  %v1530_v10 = vld [vmem:[%s6219_s14 + $0x8] sm:$0xff]  ;;  %s5416_s9 = smov 64   ;;  %s5419_s10 = smov 40  }
  0xcf   : > { %4771 = vmatprep.subr.bf16.mxu1 %v4770_v8  ;;  %v1259_v30 = vld [vmem:[%s6297_s7] sm:$0xff]  ;;  %s6305_s5 = sld [smem:[#allocation41_spill]] }
  0xd0   : > { %4773 = vmatpush3.bf16.msra.mxu1 %v4770_v8  ;;  %v1351_v28 = vld [vmem:[%s6295_s26] sm:$0xf]  ;;  %v4778_v32 = vpack.c.bf16 %v1260_v31, %v1259_v30  ;;  %s6298_s26 = sld [smem:[#allocation39_spill]]  ;;  %v4802_v8 = vpack.c.bf16 %v1616_v7, %v1615_v6 }
  0xd1   : > { %4775 = vmatprep.subr.bf16.mxu1 %v4774_v11  ;;  %v4297_v46 = vld [vmem:[%s6299_s2] ss:$0 sm:$0xff]  ;;  %s5414_s2 = smov 56  }
  0xd2   : > { %4779 = vmatprep.subr.bf16.mxu0 %v4778_v32  ;;  %v4303_v51 = vld [vmem:[%s6300_s12] ss:$0 sm:$0xff]  ;;  %s5417_s12 = smov 104  }
  0xd3   : > { %4523 = vmatmul.mubr.msk.f32.vlgmr.msra.gmra.mrb[0].mxu0 %vm967_vm1, %v961_v5  ;;  %v1529_v9 = vld [vmem:[%s6219_s14] sm:$0xff] }
  0xd4   : > { %4777 = vmatpush3.bf16.msra.mxu1 %v4774_v11  ;;  %4781 = vmatpush3.bf16.msra.mxu0 %v4778_v32  ;;  %v1531_v11 = vld [vmem:[%s6219_s14 + $0x10] sm:$0xff]  ;;  %v4310_v30 = vld [vmem:[%s6222_s17] ss:$0 sm:$0xff] }
  0xd5   : > { %4547 = vmatprep.subr.mxu1 %v5406_v12  ;;  %4783 = vmatprep.subr.bf16.mxu0 %v4782_v35  ;;  %s6306_s1 = smov %s6305_s5 }
  0xd6   : > { %v1440_v36 = vld [vmem:[%s6298_s26] sm:$0xff]  ;;  %v1441_v37 = vld [vmem:[%s6298_s26 + $0x8] sm:$0xff]  ;;  %v1442_v40 = vld [vmem:[%s6298_s26 + $0x10] sm:$0xff] }
  0xd7   : > { %v4787_v39 = vpack.c.bf16 %v1441_v37, %v1440_v36  ;;  %v1443_v41 = vld [vmem:[%s6298_s26 + $0x18] sm:$0xff] }
  0xd8   : > { %4785 = vmatpush3.bf16.msra.mxu0 %v4782_v35  ;;  %v4790_v44 = vpack.c.bf16 %v1443_v41, %v1442_v40 }
  0xd9   : > { %4792 = vmatprep.subr.bf16.mxu0 %v5408_v38 }
 0x1a6   : > { %v4524_v14 = vpop.f32.mrb[0].mxu0 }
 0x1a7   : > { %v1145_v15 = vadd.f32 %v4524_v14, %v4296_v13  ;;  %v1128_v16 = vpop.f32.mrb[1].mxu0  ;;  %v1532_v14 = vld [vmem:[%s6219_s14 + $0x18] sm:$0xff] }
 0x1a8   : > { %v1144_v17 = vadd.f32 %v4296_v13, %v1128_v16  ;;  %v4793_v13 = vpack.c.bf16 %v1530_v10, %v1529_v9  ;;  %v4300_v16 = vld [vmem:[%s6301_s30] ss:$0 sm:$0xff]  ;;  %s5418_s30 = smov 48  }
 0x1a9   : > { %v1149_v18 = vmul.f32 0.70710677, %v1145_v15  ;;  %v1147_v25 = vmul.f32 0.5, %v1145_v15  ;;  %v4796_v15 = vpack.c.bf16 %v1532_v14, %v1531_v11 }
 0x1aa   : > { %v1148_v19 = vmul.f32 0.70710677, %v1144_v17  ;;  %v1146_v23 = vmul.f32 0.5, %v1144_v17 }
 0x1ab   : > { %5090 = verf.f32 %v1149_v18  ;;  %v4306_v18 = vld [vmem:[%s6218_s13] ss:$0 sm:$0xff] }
 0x1ac   : > { %5092 = verf.f32 %v1148_v19 }
 0x1b5   : > { %v5091_v20 = vpop.eup %5090 }
 0x1b6   : > { %v5093_v21 = vpop.eup %5092  ;;  %v1153_v22 = vadd.f32 1.0, %v5091_v20 }
 0x1b7   : > { %v1152_v24 = vadd.f32 1.0, %v5093_v21 }
 0x1b8   : > { %v1155_v27 = vmul.f32 %v1153_v22, %v1147_v25 }
 0x1b9   : > { %v1154_v26 = vmul.f32 %v1152_v24, %v1146_v23 }
 0x1bb   : > { %4533 = vmatprep.mubr.msk.f32.mxu1 %vm1167_vm2, %v1154_v26 }
 0x1bc   : > { %4534 = vmatmul.mubr.msk.f32.vlgmr.msra.gmra.mrb[0].mxu1 %vm1167_vm2, %v1155_v27 }
 0x1bd   : > { %4548 = vmatpush3.msk.msra.mxu1 %vm974_vm0, %v1351_v28  ;;  %4549 = vmatprep.mubr.msk.f32.mxu1 %vm5407_vm3, %v5406_v12 }
 0x1be   : > { %4786 = vmatprep.subr.bf16.mxu1 %v5408_v38 }
 0x1c0   : > { %4550 = vmatmul.mubr.msk.f32.vlgmr.msra.gmra.mrb[2].mxu1 %vm967_vm1, %v964_v29 }
 0x1c1   : > { %4560 = vmatprep.mubr.msk.f32.mxu1 %vm5407_vm3, %v5406_v12  ;;  %4788 = vmatpush3.bf16.msra.mxu1 %v4787_v39 }
 0x1c2   : > { %4789 = vmatprep.subr.bf16.mxu1 %v5408_v38 }
 0x1c5   : > { %4791 = vmatpush3.bf16.msra.mxu1 %v4790_v44 }
 0x1c6   : > { %4799 = vmatprep.subr.bf16.mxu1 %v4798_v45 }
 0x28f   : > { %v4535_v47 = vpop.f32.mrb[0].mxu1 }
 0x290   : > { %v1246_v48 = vadd.f32 %v4535_v47, %v4297_v46  ;;  %v1240_v49 = vpop.f32.mrb[1].mxu1 }
 0x291   : > { %v1241_v50 = vadd.f32 %v4297_v46, %v1240_v49 }
 0x292   : > { %v1252_v52 = vmul.f32 0.70710677, %v1246_v48  ;;  %v1250_v63 = vmul.f32 0.5, %v1246_v48 }
 0x293   : > { %v1251_v53 = vmul.f32 0.70710677, %v1241_v50  ;;  %v1431_v54 = vpop.f32.mrb[2].mxu1  ;;  %v1249_v61 = vmul.f32 0.5, %v1241_v50 }
 0x294   : > { %5094 = verf.f32 %v1252_v52  ;;  %v1432_v55 = vadd.f32 %v4303_v51, %v1431_v54  ;;  %v4551_v56 = vpop.f32.mrb[3].mxu1 }
 0x295   : > { %5096 = verf.f32 %v1251_v53 }
 0x296   : > { %v1436_v57 = vmul.f32 0.70710677, %v1432_v55  ;;  %v1435_v0 = vmul.f32 0.5, %v1432_v55 }
 0x298   : > { %5098 = verf.f32 %v1436_v57 }
 0x29e   : > { %v5095_v58 = vpop.eup %5094 }
 0x29f   : > { %v5097_v59 = vpop.eup %5096  ;;  %v1256_v60 = vadd.f32 1.0, %v5095_v58 }
 0x2a0   : > { %v1255_v62 = vadd.f32 1.0, %v5097_v59 }
 0x2a1   : > { %v1258_v3 = vmul.f32 %v1256_v60, %v1250_v63 }
 0x2a2   : > { %v5099_v1 = vpop.eup %5098  ;;  %v1257_v2 = vmul.f32 %v1255_v62, %v1249_v61 }
 0x2a3   : > { %v1438_v4 = vadd.f32 1.0, %v5099_v1 }
 0x2a4   : > { %4544 = vmatprep.mubr.msk.f32.mxu0 %vm1167_vm2, %v1257_v2 }
 0x2a5   : > { %4545 = vmatmul.mubr.msk.f32.vlgmr.msra.gmra.mrb[2].mxu0 %vm1167_vm2, %v1258_v3  ;;  %v1439_v5 = vmul.f32 %v1438_v4, %v1435_v0 }
 0x2a6   : > { %4571 = vmatprep.mubr.msk.f32.mxu0 %vm5407_vm3, %v5406_v12  ;;  %4794 = vmatpush3.bf16.msra.mxu0 %v4793_v13 }
 0x2a7   : > { %4561 = vmatmul.mubr.msk.f32.vlgmr.msra.gmra.mrb[4].mxu1 %vm1167_vm2, %v1439_v5  ;;  %4795 = vmatprep.subr.bf16.mxu0 %v5408_v38 }
 0x2a8   : > { %4801 = vmatpush3.bf16.msra.mxu1 %v4798_v45 }
 0x2a9   : > { %4803 = vmatprep.subr.bf16.mxu1 %v4802_v8 }
 0x2aa   : > { %4797 = vmatpush3.bf16.msra.mxu0 %v4796_v15 }
 0x2ac   : > { %4805 = vmatpush3.bf16.msra.mxu1 %v4802_v8 }
 0x378   : > { %v4546_v17 = vpop.f32.mrb[2].mxu0 }
 0x379   : > { %v1342_v19 = vpop.f32.mrb[3].mxu0  ;;  %v5903_v22 = vadd.f32 %v4546_v17, %v4300_v16 }
 0x37a   : > { %v5901_v20 = vadd.f32 %v4300_v16, %v1342_v19  ;;  %v1520_v21 = vpop.f32.mrb[4].mxu1 }
 0x37b   : > { %v1521_v23 = vadd.f32 %v4306_v18, %v1520_v21  ;;  %v4562_v24 = vpop.f32.mrb[5].mxu1 }
 0x37c   : > { %4582 = vmatprep.mubr.msk.f32.mxu1 %vm1167_vm2, %v5901_v20 }
 0x37d   : > { %4583 = vmatmul.mubr.msk.f32.vlgmr.msra.gmra.mrb[6].mxu1 %vm1167_vm2, %v5903_v22  ;;  %v1525_v25 = vmul.f32 0.70710677, %v1521_v23  ;;  %v1524_v26 = vmul.f32 0.5, %v1521_v23 }
 0x37f   : > { %5100 = verf.f32 %v1525_v25 }
 0x389   : > { %v5101_v27 = vpop.eup %5100 }
 0x38a   : > { %v1527_v28 = vadd.f32 1.0, %v5101_v27 }
 0x38c   : > { %v1528_v29 = vmul.f32 %v1527_v28, %v1524_v26 }
 0x38e   : > { %4572 = vmatmul.mubr.msk.f32.vlgmr.msra.gmra.mrb[4].mxu0 %vm1167_vm2, %v1528_v29 }
 0x450   : > { %v4584_v31 = vpop.f32.mrb[6].mxu1 }
 0x451   : > { %v1702_v32 = vadd.f32 %v4584_v31, %v4310_v30  ;;  %v1696_v33 = vpop.f32.mrb[7].mxu1 }
 0x452   : > { %v1697_v34 = vadd.f32 %v4310_v30, %v1696_v33 }
 0x453   : > { %v5922_v37 = vmul.f32 0.35355338, %v1702_v32 }
 0x454   : > { %v5913_v35 = vpack.i.bf16 %v1702_v32, %v1697_v34  ;;  %v5915_v36 = vmul.f32 0.35355338, %v1697_v34 }
 0x456   : > { %5021 = vrot.lane.b32.xlu0 %v5913_v35, %s5409_s0  ;;  %1910 = vrot.lane.b32.xlu1 %v5915_v36, %s5410_s19  ;;  %s6309_s0 = sld [smem:[#allocation42_spill]] }
 0x457   : > { %4589 = vmatprep.mubr.msk.f32.mxu0 %vm1713_vm4, %v5915_v36 }
 0x45a   : > { %5026 = vrot.lane.b32.xlu0 %v5913_v35, %s5411_s29  ;;  %1912 = vrot.lane.b32.xlu1 %v5922_v37, %s5410_s19 }
 0x45e   : > { %5031 = vrot.lane.b32.xlu0 %v5913_v35, %s5412_s8  ;;  %2274 = vrot.lane.b32.xlu1 %v5915_v36, %s5413_s4 }
 0x461   : > { %v5932_v39 = vpop.f32.mrb[4].mxu0 }
 0x462   : > { %2276 = vrot.lane.b32.xlu0 %v5922_v37, %s5413_s4  ;;  %v4573_v40 = vpop.f32.mrb[5].mxu0 }
 0x4c8   : > { %v5022_v41 = vpop.permute.xlu0 %5021  ;;  %v1911_v51 = vpop.permute.xlu1 %1910 }
 0x4c9   : > { %v5024_v42 = vunpack.i.h.bf16 %v5022_v41  ;;  %v5023_v43 = vunpack.i.l.bf16 %v5022_v41 }
 0x4cb   : > { %v4806_v45 = vpack.c.bf16 %v5024_v42, %v5023_v43 }
 0x4cc   : > { %v5027_v46 = vpop.permute.xlu0 %5026  ;;  %v1913_v55 = vpop.permute.xlu1 %1912 }
 0x4cd   : > { %v5029_v47 = vunpack.i.h.bf16 %v5027_v46  ;;  %v5028_v48 = vunpack.i.l.bf16 %v5027_v46  ;;  %4808 = vmatprep.subr.msk.bf16.mxu0 %vm5936_vm5, %v4806_v45 }
 0x4ce   : > { %4811 = vmatpush3.bf16.xpose.msk.msra.mxu0 %vm5936_vm5, %v4806_v45 }
 0x4cf   : > { %v4816_v49 = vpack.c.bf16 %v5029_v47, %v5028_v48 }
 0x4d0   : > { %v5032_v50 = vpop.permute.xlu0 %5031  ;;  %v2275_v56 = vpop.permute.xlu1 %2274 }
 0x4d1   : > { %v5034_v52 = vunpack.i.h.bf16 %v5032_v50  ;;  %v5033_v53 = vunpack.i.l.bf16 %v5032_v50  ;;  %4818 = vmatprep.subr.msk.bf16.mxu0 %vm5936_vm5, %v4816_v49 }
 0x4d3   : > { %v4826_v54 = vpack.c.bf16 %v5034_v52, %v5033_v53 }
 0x4d4   : > { %v2277_v57 = vpop.permute.xlu0 %2276 }
 0x4d5   : > { %4590 = vmatmul.mubr.msk.f32.vlgmr.msra.gmra.mrb[6].mxu0 %vm1713_vm4, %v5922_v37 }
 0x4d6   : > { %4821 = vmatpush3.bf16.xpose.msk.msra.mxu0 %vm5936_vm5, %v4816_v49  ;;  %4603 = vmatprep.mubr.msk.f32.mxu0 %vm1713_vm4, %v1911_v51 }
 0x4d7   : > { %4828 = vmatprep.subr.msk.bf16.mxu0 %vm5936_vm5, %v4826_v54 }
 0x4dd   : > { %4604 = vmatmul.mubr.msk.f32.vlgmr.msra.gmra.mrb[8].mxu0 %vm1713_vm4, %v1913_v55 }
 0x4de   : > { %4831 = vmatpush3.bf16.xpose.msk.msra.mxu0 %vm5936_vm5, %v4826_v54  ;;  %4627 = vmatprep.mubr.msk.f32.mxu0 %vm1713_vm4, %v2275_v56  ;;  %v2853_v56 = vld [vmem:[%s6225_s20] sm:$0xff] }
 0x4e5   : > { %4628 = vmatmul.mubr.msk.f32.vlgmr.msra.gmra.mrb[10].mxu0 %vm1713_vm4, %v2277_v57  ;;  %v2854_v57 = vld [vmem:[%s6225_s20 + $0x8] sm:$0xff] }
 0x5a8   : > { %v4591_v58 = vpop.f32.mrb[6].mxu0 }
 0x5a9   : > { %v1790_v59 = vpop.f32.mrb[7].mxu0  ;;  %v1803_v60 = vsel %vm1799_vm6, %v4591_v58, -inf }
 0x5aa   : > { %1804 = vmax.xlane.f32.xlu0 %v1803_v60  ;;  %v1800_v61 = vsel %vm1799_vm6, %v1790_v59, -inf  ;;  %v2855_v60 = vld [vmem:[%s6225_s20 + $0x10] sm:$0xff] }
 0x5ab   : > { %1801 = vmax.xlane.f32.xlu1 %v1800_v61  ;;  %v2856_v61 = vld [vmem:[%s6225_s20 + $0x18] sm:$0xff] }
 0x5b0   : > { %v4605_v62 = vpop.f32.mrb[8].mxu0 }
 0x5b1   : > { %v1992_v63 = vpop.f32.mrb[9].mxu0  ;;  %v2004_v0 = vsel %vm1799_vm6, %v4605_v62, -inf }
 0x5b2   : > { %2005 = vmax.xlane.f32.xlu1 %v2004_v0  ;;  %v2001_v1 = vsel %vm1799_vm6, %v1992_v63, -inf  ;;  %v4308_v0 = vld [vmem:[%s6220_s15] ss:$0 sm:$0xff] }
 0x5b3   : > { %2002 = vmax.xlane.f32.xlu0 %v2001_v1  ;;  %v1610_v1 = vadd.f32 %v4308_v0, %v5932_v39  ;;  %v4325_v39 = vld [vmem:[%s6223_s18 + $0x8] sm:$0xff] }
 0x5b4   : > { %v2938_v0 = vld [vmem:[#allocation5 + $0x8] sm:$0xff] }
 0x5b8   : > { %v5962_v2 = vpop.f32.mrb[10].mxu0 }
 0x5b9   : > { %v5964_v3 = vpop.f32.mrb[11].mxu0  ;;  %v2368_v28 = vsel %vm1799_vm6, %v5962_v2, -inf }
 0x5ba   : > { %v2365_v27 = vsel %vm1799_vm6, %v5964_v3, -inf }
 0x637   : > { %v1805_v4 = vpop.xlane.xlu0 %1804 }
 0x638   : > { %v1807_v5 = vsub.f32 %v4591_v58, %v1805_v4  ;;  %v1802_v6 = vpop.xlane.xlu1 %1801 }
 0x639   : > { %v1806_v7 = vsub.f32 %v1790_v59, %v1802_v6  ;;  %v4847_v59 = vpack.c.bf16 %v2854_v57, %v2853_v56  ;;  %v4345_v56 = vld [vmem:[%s6223_s18 + $0x18] sm:$0xff] }
 0x63a   : > { %v1810_v8 = vmul.f32 1.442695, %v1807_v5 }
 0x63b   : > { %v1808_v9 = vmul.f32 1.442695, %v1806_v7 }
 0x63c   : > { %5102 = vpow2.f32 %v1810_v8 }
 0x63d   : > { %5104 = vpow2.f32 %v1808_v9 }
 0x63f   : > { %v2006_v10 = vpop.xlane.xlu1 %2005 }
 0x640   : > { %v2008_v11 = vsub.f32 %v4605_v62, %v2006_v10  ;;  %v2003_v13 = vpop.xlane.xlu0 %2002 }
 0x641   : > { %v2007_v14 = vsub.f32 %v1992_v63, %v2003_v13  ;;  %v4850_v63 = vpack.c.bf16 %v2856_v61, %v2855_v60 }
 0x642   : > { %v2011_v15 = vmul.f32 1.442695, %v2008_v11 }
 0x643   : > { %v2009_v16 = vmul.f32 1.442695, %v2007_v14 }
 0x644   : > { %5106 = vpow2.f32 %v2011_v15 }
 0x645   : > { %5108 = vpow2.f32 %v2009_v16 }
 0x646   : > { %v5103_v17 = vpop.eup %5102 }
 0x647   : > { %v5105_v18 = vpop.eup %5104  ;;  %v1815_v19 = vsel %vm1799_vm6, %v5103_v17, 0.0 }
 0x648   : > { %1816 = vadd.xlane.f32.xlu1 %v1815_v19  ;;  %v1812_v21 = vsel %vm1799_vm6, %v5105_v18, 0.0 }
 0x649   : > { %1813 = vadd.xlane.f32.xlu0 %v1812_v21 }
 0x64e   : > { %v5968_v23 = vpop.eup %5106 }
 0x64f   : > { %v5109_v24 = vpop.eup %5108  ;;  %v2016_v25 = vsel %vm1799_vm6, %v5968_v23, 0.0 }
 0x650   : > { %2017 = vadd.xlane.f32.xlu1 %v2016_v25  ;;  %v2013_v26 = vsel %vm1799_vm6, %v5109_v24, 0.0 }
 0x651   : > { %2014 = vadd.xlane.f32.xlu0 %v2013_v26 }
 0x661   : > { %5041 = vrot.lane.b32.xlu1 %v5913_v35, %s5414_s2  ;;  %s6307_s2 = sld [smem:[#allocation20_spill]] }
 0x665   : > { %5046 = vrot.lane.b32.xlu1 %v5913_v35, %s5415_s11 }
 0x667   : > { %5036 = vrot.lane.b32.xlu0 %v5913_v35, %s5416_s9  ;;  %s944_s11 = sand.u32 1, %s6307_s2   ;;  %s6308_s9 = sld [smem:[#allocation25_spill]] }
 0x668   : > { %s4118_s29 = scalar_lea.sflag [#allocation4], %s944_s11 }
 0x669   : > { %2561 = vrot.lane.b32.xlu1 %v5922_v37, %s5417_s12 }
 0x66b   : > { %2559 = vrot.lane.b32.xlu0 %v5915_v36, %s5417_s12 }
 0x66d   : > { %p6310_p1 = scmp.ne.s32.totalorder %s6308_s9, 0 }
 0x68a   : > { %2366 = vmax.xlane.f32.xlu0 %v2365_v27 }
 0x68d   : > { %2369 = vmax.xlane.f32.xlu1 %v2368_v28 }
 0x69e   : > { %5051 = vrot.lane.b32.xlu1 %v5913_v35, %s5418_s30  ;;  %s6304_s30 = sld [smem:[#allocation40_spill]] }
 0x6a2   : > { %5056 = vrot.lane.b32.xlu1 %v5913_v35, %s5419_s10  ;;  %s945_s10 = scalar_lea.vmem [#allocation13], %s944_s11 }
 0x6a3   : > { %s4130_s28 = sshll.u32 %s945_s10, 4  ;;  %s6165_s28 = int_to_ptr.vmem [resolvable:$true] %s4130_s28 }
 0x6d5   : > { %v1817_v30 = vpop.xlane.xlu1 %1816 }
 0x6d6   : > { %v1814_v29 = vpop.xlane.xlu0 %1813 }
 0x6d7   : > { %5110 = vrcp.f32 %v1814_v29 }
 0x6d8   : > { %5112 = vrcp.f32 %v1817_v30 }
 0x6dd   : > { %v2018_v31 = vpop.xlane.xlu1 %2017 }
 0x6de   : > { %v2015_v32 = vpop.xlane.xlu0 %2014 }
 0x6df   : > { %5114 = vrcp.f32 %v2015_v32 }
 0x6e0   : > { %5116 = vrcp.f32 %v2018_v31 }
 0x6e1   : > { %v5111_v33 = vpop.eup %5110  ;;  %v5042_v34 = vpop.permute.xlu1 %5041 }
 0x6e2   : > { %v5037_v36 = vpop.permute.xlu0 %5036  ;;  %v1820_v37 = vmul.f32 %v5111_v33, %v5105_v18  ;;  %v5044_v40 = vunpack.i.h.bf16 %v5042_v34  ;;  %v5043_v41 = vunpack.i.l.bf16 %v5042_v34  ;;  %v5113_v46 = vpop.eup %5112  ;;  %v4336_v34 = vld [vmem:[%s6223_s18 + $0x10] sm:$0xff] }
 0x6e3   : > { %v5039_v42 = vunpack.i.h.bf16 %v5037_v36  ;;  %v5038_v43 = vunpack.i.l.bf16 %v5037_v36  ;;  %v1821_v53 = vmul.f32 %v5113_v46, %v5103_v17 }
 0x6e4   : > { %4596 = vmatprep.mubr.msk.f32.mxu1 %vm1799_vm6, %v1820_v37  ;;  %v4822_v50 = vpack.c.bf16 %v5044_v40, %v5043_v41 }
 0x6e5   : > { %v4812_v45 = vpack.c.bf16 %v5039_v42, %v5038_v43  ;;  %v5047_v35 = vpop.permute.xlu1 %5046 }
 0x6e6   : > { %v5049_v47 = vunpack.i.h.bf16 %v5047_v35  ;;  %v5048_v48 = vunpack.i.l.bf16 %v5047_v35  ;;  %v2560_v49 = vpop.permute.xlu0 %2559 }
 0x6e7   : > { %4813 = vmatprep.subr.bf16.mxu1 %v4812_v45  ;;  %4646 = vmatprep.mubr.msk.f32.mxu0 %vm1713_vm4, %v2560_v49 }
 0x6e8   : > { %v4836_v51 = vpack.c.bf16 %v5049_v47, %v5048_v48  ;;  %4815 = vmatpush3.bf16.msra.mxu1 %v4812_v45 }
 0x6e9   : > { %v5115_v52 = vpop.eup %5114  ;;  %4823 = vmatprep.subr.bf16.mxu1 %v4822_v50  ;;  %v2562_v62 = vpop.permute.xlu1 %2561 }
 0x6ea   : > { %v5117_v54 = vpop.eup %5116  ;;  %4838 = vmatprep.subr.msk.bf16.mxu0 %vm5936_vm5, %v4836_v51  ;;  %v2021_v55 = vmul.f32 %v5115_v52, %v5109_v24 }
 0x6eb   : > { %4597 = vmatmul.mubr.msk.f32.vlgmr.msra.gmra.mrb[8].mxu1 %vm1799_vm6, %v1821_v53  ;;  %4841 = vmatpush3.bf16.xpose.msk.msra.mxu0 %vm5936_vm5, %v4836_v51  ;;  %v2022_v58 = vmul.f32 %v5117_v54, %v5968_v23 }
 0x6ec   : > { %4825 = vmatpush3.bf16.msra.mxu1 %v4822_v50  ;;  %4610 = vmatprep.mubr.msk.f32.mxu1 %vm1799_vm6, %v2021_v55 }
 0x6ed   : > { %4846 = vmatprep.subr.bf16.mxu0 %v5408_v38  ;;  %4613 = vmatprep.subr.mxu1 %v4325_v39 }
 0x6ef   : > { %4611 = vmatmul.mubr.msk.f32.vlgmr.msra.gmra.mrb[10].mxu1 %vm1799_vm6, %v2022_v58 }
 0x6f0   : > { %4614 = vmatpush3.msra.mxu1 %v4325_v39 }
 0x6f2   : > { %4647 = vmatmul.mubr.msk.f32.vlgmr.msra.gmra.mrb[12].mxu0 %vm1713_vm4, %v2562_v62 }
 0x6f3   : > { %4848 = vmatpush3.bf16.msra.mxu0 %v4847_v59  ;;  %4669 = vmatprep.mubr.msk.f32.mxu0 %vm5407_vm3, %v5406_v12 }
 0x6f4   : > { %4849 = vmatprep.subr.bf16.mxu0 %v5408_v38 }
 0x6f7   : > { %4851 = vmatpush3.bf16.msra.mxu0 %v4850_v63  ;;  %v2937_v63 = vld [vmem:[#allocation5] sm:$0xff] }
 0x6fa   : > { %4670 = vmatmul.mubr.msk.f32.vlgmr.msra.gmra.mrb[14].mxu0 %vm1167_vm2, %v1610_v1  ;;  %v4852_v1 = vpack.c.bf16 %v2938_v0, %v2937_v63 }
 0x717   : > { %v2367_v4 = vpop.xlane.xlu0 %2366 }
 0x718   : > { %v2371_v5 = vsub.f32 %v5964_v3, %v2367_v4  ;;  %v3023_v4 = vld [vmem:[#allocation8] sm:$0xff] }
 0x71a   : > { %v2373_v6 = vmul.f32 1.442695, %v2371_v5  ;;  %v2370_v7 = vpop.xlane.xlu1 %2369  ;;  %v3024_v5 = vld [vmem:[#allocation8 + $0x8] sm:$0xff] }
 0x71b   : > { %v2372_v8 = vsub.f32 %v5962_v2, %v2370_v7  ;;  %v1909_v2 = vld [vmem:[%s6223_s18] sm:$0xff]  ;;  %v2939_v7 = vld [vmem:[#allocation5 + $0x10] sm:$0xff] }
 0x71c   : > { %5118 = vpow2.f32 %v2373_v6  ;;  %4618 = vmatprep.subr.mxu1 %v1909_v2  ;;  %v4860_v6 = vpack.c.bf16 %v3024_v5, %v3023_v4 }
 0x71d   : > { %v2375_v9 = vmul.f32 1.442695, %v2372_v8  ;;  %v2940_v8 = vld [vmem:[#allocation5 + $0x18] sm:$0xff] }
 0x71e   : > { %v5052_v15 = vpop.permute.xlu1 %5051  ;;  %4861 = vmatprep.subr.bf16.mxu0 %v4860_v6 }
 0x71f   : > { %5120 = vpow2.f32 %v2375_v9  ;;  %v5054_v19 = vunpack.i.h.bf16 %v5052_v15  ;;  %v5053_v21 = vunpack.i.l.bf16 %v5052_v15  ;;  %4863 = vmatpush3.bf16.msra.mxu0 %v4860_v6 }
 0x721   : > { %v4832_v25 = vpack.c.bf16 %v5054_v19, %v5053_v21 }
 0x722   : > { %v5057_v30 = vpop.permute.xlu1 %5056 }
 0x723   : > { %v5059_v36 = vunpack.i.h.bf16 %v5057_v30  ;;  %v5058_v37 = vunpack.i.l.bf16 %v5057_v30 }
 0x725   : > { %v4842_v43 = vpack.c.bf16 %v5059_v36, %v5058_v37 }
 0x726   : > { %v5119_v10 = vpop.eup %5118 }
 0x727   : > { %v2377_v11 = vsel %vm1799_vm6, %v5119_v10, 0.0 }
 0x728   : > { %2378 = vadd.xlane.f32.xlu0 %v2377_v11  ;;  %v4856_v11 = vpack.c.bf16 %v2940_v8, %v2939_v7 }
 0x729   : > { %v5121_v13 = vpop.eup %5120 }
 0x72a   : > { %v2380_v14 = vsel %vm1799_vm6, %v5121_v13, 0.0 }
 0x72c   : > { %2381 = vadd.xlane.f32.xlu0 %v2380_v14  ;;  %v3026_v14 = vld [vmem:[#allocation8 + $0x18] sm:$0xff] }
 0x7b5   : > { %v2379_v3 = vpop.xlane.xlu0 %2378 }
 0x7b6   : > { %5122 = vrcp.f32 %v2379_v3 }
 0x7b9   : > { %v2382_v17 = vpop.xlane.xlu0 %2381 }
 0x7ba   : > { %5124 = vrcp.f32 %v2382_v17 }
 0x7be   : > { %v4598_v16 = vpop.f32.mrb[8].mxu1 }
 0x7bf   : > { %v1900_v18 = vpop.f32.mrb[9].mxu1 }
 0x7c0   : > { %v5123_v29 = vpop.eup %5122 }
 0x7c1   : > { %v2385_v33 = vmul.f32 %v5123_v29, %v5119_v10 }
 0x7c2   : > { %v4612_v23 = vpop.f32.mrb[10].mxu1 }
 0x7c3   : > { %v2101_v24 = vpop.f32.mrb[11].mxu1 }
 0x7c4   : > { %4615 = vmatprep.mubr.msk.f32.mxu1 %vm1713_vm4, %v2101_v24  ;;  %v5125_v32 = vpop.eup %5124 }
 0x7c5   : > { %4616 = vmatmul.mubr.msk.f32.vlgmr.msra.gmra.mrb[12].mxu1 %vm1713_vm4, %v4612_v23  ;;  %v4648_v26 = vpop.f32.mrb[12].mxu0  ;;  %v2386_v42 = vmul.f32 %v5125_v32, %v5121_v13  ;;  %v3025_v13 = vld [vmem:[#allocation8 + $0x10] sm:$0xff]  ;;  %v4349_v23 = vld [vmem:[#allocation2] ss:$0 sm:$0xff] }
 0x7c6   : > { %4619 = vmatpush3.msra.mxu1 %v1909_v2  ;;  %4620 = vmatprep.mubr.msk.f32.mxu1 %vm1713_vm4, %v1900_v18  ;;  %v2641_v27 = vpop.f32.mrb[13].mxu0  ;;  %v2653_v31 = vsel %vm1799_vm6, %v4648_v26, -inf  ;;  %v4864_v39 = vpack.c.bf16 %v3026_v14, %v3025_v13  ;;  %v4365_v13 = vld [vmem:[%s6306_s1 + $0x8] sm:$0xff] }
 0x7c7   : > { %4833 = vmatprep.subr.bf16.mxu1 %v4832_v25  ;;  %v2650_v28 = vsel %vm1799_vm6, %v2641_v27, -inf }
 0x7c8   : > { %2651 = vmax.xlane.f32.xlu0 %v2650_v28  ;;  %4865 = vmatprep.subr.bf16.mxu0 %v4864_v39  ;;  %v4354_v28 = vld [vmem:[#allocation10] ss:$0 sm:$0xff] }
 0x7c9   : > { %4867 = vmatpush3.bf16.msra.mxu0 %v4864_v39 }
 0x7ca   : > { %4872 = vmatprep.subr.bf16.mxu0 %v5408_v38 }
 0x7cc   : > { %2654 = vmax.xlane.f32.xlu0 %v2653_v31 }
 0x7cd   : > { %4621 = vmatmul.mubr.msk.f32.vlgmr.msra.gmra.mrb[12].mxu1 %vm1713_vm4, %v4598_v16  ;;  %v6037_v40 = vpop.f32.mrb[14].mxu0 }
 0x7ce   : > { %4835 = vmatpush3.bf16.msra.mxu1 %v4832_v25  ;;  %4634 = vmatprep.mubr.msk.f32.mxu1 %vm1799_vm6, %v2385_v33  ;;  %v4671_v41 = vpop.f32.mrb[15].mxu0 }
 0x7cf   : > { %4637 = vmatprep.subr.mxu1 %v4336_v34 }
 0x7d1   : > { %4635 = vmatmul.mubr.msk.f32.vlgmr.msra.gmra.mrb[14].mxu1 %vm1799_vm6, %v2386_v42 }
 0x7d2   : > { %4638 = vmatpush3.msra.mxu1 %v4336_v34 }
 0x7d3   : > { %4843 = vmatprep.subr.bf16.mxu1 %v4842_v43 }
 0x855   : > { %v2652_v45 = vpop.xlane.xlu0 %2651 }
 0x856   : > { %v2656_v35 = vsub.f32 %v2641_v27, %v2652_v45 }
 0x858   : > { %v2658_v46 = vmul.f32 1.442695, %v2656_v35 }
 0x859   : > { %v2655_v47 = vpop.xlane.xlu0 %2654 }
 0x85a   : > { %5126 = vpow2.f32 %v2658_v46  ;;  %v2657_v48 = vsub.f32 %v4648_v26, %v2655_v47  ;;  %v2934_v26 = vadd.f32 %v4349_v23, %v6037_v40 }
 0x85c   : > { %v2660_v49 = vmul.f32 1.442695, %v2657_v48  ;;  %v3115_v27 = vmul.f32 0.35355338, %v2934_v26 }
 0x85e   : > { %5128 = vpow2.f32 %v2660_v49 }
 0x864   : > { %v5127_v50 = vpop.eup %5126 }
 0x865   : > { %v2662_v51 = vsel %vm1799_vm6, %v5127_v50, 0.0 }
 0x866   : > { %2663 = vadd.xlane.f32.xlu0 %v2662_v51 }
 0x868   : > { %v5129_v52 = vpop.eup %5128 }
 0x869   : > { %v2665_v53 = vsel %vm1799_vm6, %v5129_v52, 0.0 }
 0x86a   : > { %2666 = vadd.xlane.f32.xlu0 %v2665_v53 }
 0x8a4   : > { %v4636_v54 = vpop.f32.mrb[14].mxu1 }
 0x8a5   : > { %v2465_v55 = vpop.f32.mrb[15].mxu1 }
 0x8a6   : > { %4639 = vmatprep.mubr.msk.f32.mxu1 %vm1713_vm4, %v2465_v55 }
 0x8a7   : > { %4640 = vmatmul.mubr.msk.f32.vlgmr.msra.gmra.mrb[12].mxu1 %vm1713_vm4, %v4636_v54  ;;  %v3279_v54 = vld [vmem:[%s6305_s5] sm:$0xff] }
 0x8a8   : > { %4845 = vmatpush3.bf16.msra.mxu1 %v4842_v43 }
 0x8a9   : > { %4656 = vmatprep.subr.mxu1 %v4345_v56 }
 0x8f3   : > { %v2664_v57 = vpop.xlane.xlu0 %2663 }
 0x8f4   : > { %5130 = vrcp.f32 %v2664_v57 }
 0x8f7   : > { %v2667_v58 = vpop.xlane.xlu0 %2666 }
 0x8f8   : > { %5132 = vrcp.f32 %v2667_v58 }
 0x8fe   : > { %v5131_v59 = vpop.eup %5130 }
 0x8ff   : > { %v2670_v60 = vmul.f32 %v5131_v59, %v5127_v50 }
 0x901   : > { %4653 = vmatprep.mubr.msk.f32.mxu1 %vm1799_vm6, %v2670_v60 }
 0x902   : > { %v5133_v61 = vpop.eup %5132 }
 0x903   : > { %v2671_v62 = vmul.f32 %v5133_v61, %v5129_v52 }
 0x905   : > { %4654 = vmatmul.mubr.msk.f32.vlgmr.msra.gmra.mrb[16].mxu1 %vm1799_vm6, %v2671_v62 }
 0x906   : > { %4657 = vmatpush3.msra.mxu1 %v4345_v56 }
 0x907   : > { %4853 = vmatprep.subr.bf16.mxu1 %v4852_v1 }
 0x9d8   : > { %v4655_v9 = vpop.f32.mrb[16].mxu1 }
 0x9d9   : > { %v2750_v10 = vpop.f32.mrb[17].mxu1 }
 0x9da   : > { %4658 = vmatprep.mubr.msk.f32.mxu1 %vm1713_vm4, %v2750_v10 }
 0x9db   : > { %4659 = vmatmul.mubr.msk.f32.vlgmr.msra.gmra.mrb[12].mxu1 %vm1713_vm4, %v4655_v9 }
 0x9dc   : > { %4855 = vmatpush3.bf16.msra.mxu1 %v4852_v1  ;;  %4680 = vmatprep.mubr.msk.f32.mxu1 %vm1167_vm2, %v5901_v20  ;;  %v4348_v20 = vld [vmem:[%s6304_s30] ss:$0 sm:$0xff]  ;;  %s4381_s30 = sshll.u32 %s5587_s3, 4  ;;  %s5420_s3 = smov [#allocation13]  }
 0x9dd   : > { %4857 = vmatprep.subr.bf16.mxu1 %v4856_v11  ;;  %s5322_s8 = sshll.u32 %s5420_s3, 4  ;;  %s5323_s8 = int_to_ptr.vmem [resolvable:$false] %s5322_s8 }
 0x9de   : > { %s5324_s2 = scalar_lea.vmem %s5323_s8, 32  ;;  %p5325_p5 = scmp.lt.s32.totalorder %s6165_s28, %s5323_s8 }
 0x9e0   : > { %4859 = vmatpush3.bf16.msra.mxu1 %v4856_v11 }
 0x9e1   : > { %4868 = vmatprep.subr.bf16.mxu1 %v5408_v38 }
 0x9e3   : > { %4681 = vmatmul.mubr.msk.f32.vlgmr.msra.gmra.mrb[18].mxu1 %vm1167_vm2, %v5903_v22  ;;  %v4351_v22 = vld [vmem:[#allocation7] ss:$0 sm:$0xff] }
 0x9e4   : > { %4698 = vmatprep.mubr.msk.f32.mxu1 %vm5407_vm3, %v5406_v12 }
 0xaae   : > { %v4660_v2 = vpop.f32.mrb[12].mxu1 }
 0xaaf   : > { %v2833_v3 = vpop.f32.mrb[13].mxu1  ;;  %v2852_v16 = vadd.f32 %v4660_v2, %v4348_v20 }
 0xab0   : > { %v2851_v15 = vadd.f32 %v4348_v20, %v2833_v3 }
 0xab2   : > { %4691 = vmatprep.mubr.msk.f32.mxu0 %vm1167_vm2, %v2851_v15 }
 0xab3   : > { %4692 = vmatmul.mubr.msk.f32.vlgmr.msra.gmra.mrb[16].mxu0 %vm1167_vm2, %v2852_v16 }
 0xab4   : > { %4705 = vmatprep.mubr.msk.f32.mxu0 %vm5407_vm3, %v5406_v12 }
 0xab6   : > { %v4682_v17 = vpop.f32.mrb[18].mxu1 }
 0xab7   : > { %v3020_v18 = vadd.f32 %v4682_v17, %v4351_v22  ;;  %v3014_v19 = vpop.f32.mrb[19].mxu1 }
 0xab8   : > { %v3015_v21 = vadd.f32 %v4351_v22, %v3014_v19 }
 0xaba   : > { %v4869_v24 = vpack.c.bf16 %v3020_v18, %v3015_v21  ;;  %v6067_v25 = vpack.i.bf16 %v3020_v18, %v3015_v21 }
 0xabc   : > { %4871 = vmatpush3.bf16.xpose.msk.msra.mxu1 %vm5936_vm5, %v4869_v24 }
 0xabd   : > { %4879 = vmatprep.subr.bf16.mxu1 %v5408_v38 }
 0xac3   : > { %4699 = vmatmul.mubr.msk.f32.vlgmr.msra.gmra.mrb[20].mxu1 %vm1713_vm4, %v3115_v27 }
 0xac4   : > { %4719 = vmatprep.mubr.msk.f32.mxu1 %vm5407_vm3, %v5406_v12 }
 0xb86   : > { %v4693_v29 = vpop.f32.mrb[16].mxu0 }
 0xb87   : > { %v3112_v30 = vadd.f32 %v4693_v29, %v4354_v28  ;;  %v3106_v31 = vpop.f32.mrb[17].mxu0 }
 0xb88   : > { %v3107_v32 = vadd.f32 %v4354_v28, %v3106_v31 }
 0xb8a   : > { %v4873_v33 = vpack.c.bf16 %v3112_v30, %v3107_v32  ;;  %v6076_v34 = vpack.i.bf16 %v3112_v30, %v3107_v32 }
 0xb8c   : > { %4874 = vmatpush3.bf16.msra.mxu0 %v4873_v33 }
 0xb8d   : > { %4875 = vmatprep.subr.bf16.mxu0 %v5408_v38 }
 0xb96   : > { %v3191_v36 = vpop.f32.mrb[20].mxu1 }
 0xb97   : > { %v4700_v37 = vpop.f32.mrb[21].mxu1  ;;  %v3195_v40 = vsel %vm1799_vm6, %v3191_v36, -inf }
 0xb98   : > { %3196 = vmax.xlane.f32.xlu0 %v3195_v40 }
 0xbae   : > { %5061 = vrot.lane.b32.xlu0 %v6067_v25, %s5410_s19 }
 0xbb2   : > { %3280 = vrot.lane.b32.xlu0 %v3115_v27, %s5410_s19 }
 0xc25   : > { %v3197_v41 = vpop.xlane.xlu0 %3196 }
 0xc26   : > { %v3198_v42 = vsub.f32 %v3191_v36, %v3197_v41 }
 0xc28   : > { %v3199_v43 = vmul.f32 1.442695, %v3198_v42 }
 0xc29   : > { %v5062_v47 = vpop.permute.xlu0 %5061 }
 0xc2a   : > { %5134 = vpow2.f32 %v3199_v43  ;;  %v5064_v48 = vunpack.i.h.bf16 %v5062_v47  ;;  %v5063_v49 = vunpack.i.l.bf16 %v5062_v47 }
 0xc2c   : > { %v4876_v52 = vpack.c.bf16 %v5064_v48, %v5063_v49 }
 0xc2d   : > { %v3281_v53 = vpop.permute.xlu0 %3280 }
 0xc34   : > { %v5135_v45 = vpop.eup %5134 }
 0xc35   : > { %v3201_v35 = vsel %vm1799_vm6, %v5135_v45, 0.0 }
 0xc36   : > { %3202 = vadd.xlane.f32.xlu1 %v3201_v35 }
 0xcc3   : > { %v3203_v46 = vpop.xlane.xlu1 %3202 }
 0xcc4   : > { %5136 = vrcp.f32 %v3203_v46 }
 0xcce   : > { %v5137_v50 = vpop.eup %5136 }
 0xccf   : > { %v3205_v51 = vmul.f32 %v5137_v50, %v5135_v45 }
 0xcd1   : > { %4706 = vmatmul.mubr.msk.f32.vlgmr.msra.gmra.mrb[18].mxu0 %vm1799_vm6, %v3205_v51 }
 0xcd2   : > { %4878 = vmatpush3.bf16.xpose.msk.msra.mxu0 %vm5936_vm5, %v4876_v52  ;;  %4712 = vmatprep.mubr.msk.f32.mxu0 %vm5407_vm3, %v5406_v12  ;;  %v4372_v52 = vld [vmem:[%s6306_s1 + $0x10] sm:$0xff] }
 0xcd3   : > { %4727 = vmatprep.subr.mxu0 %v5406_v12 }
 0xcd9   : > { %4713 = vmatmul.mubr.msk.f32.vlgmr.msra.gmra.mrb[20].mxu0 %vm1713_vm4, %v3281_v53 }
 0xcda   : > { %4729 = vmatprep.mubr.msk.f32.mxu0 %vm5407_vm3, %v5406_v12  ;;  %4728 = vmatpush3.msra.mxu0 %v3279_v54 }
 0xcdb   : > { %4886 = vmatprep.subr.bf16.mxu0 %v5408_v38 }
 0xda4   : > { %v3275_v55 = vpop.f32.mrb[18].mxu0 }
 0xda5   : > { %v4707_v56 = vpop.f32.mrb[19].mxu0  ;;  %4730 = vmatmul.mubr.msk.f32.vlgmr.msra.gmra.mrb[22].mxu0 %vm1713_vm4, %v3275_v55 }
 0xda6   : > { %4743 = vmatprep.mubr.msk.f32.mxu0 %vm5407_vm3, %v5406_v12 }
 0xdac   : > { %v3358_v57 = vpop.f32.mrb[20].mxu0 }
 0xdad   : > { %v4714_v58 = vpop.f32.mrb[21].mxu0  ;;  %v3362_v59 = vsel %vm1799_vm6, %v3358_v57, -inf }
 0xdae   : > { %3363 = vmax.xlane.f32.xlu0 %v3362_v59 }
 0xdc4   : > { %3602 = vrot.lane.b32.xlu0 %v3115_v27, %s5413_s4 }
 0xe3b   : > { %v3364_v60 = vpop.xlane.xlu0 %3363 }
 0xe3c   : > { %v3365_v61 = vsub.f32 %v3358_v57, %v3364_v60 }
 0xe3e   : > { %v3366_v62 = vmul.f32 1.442695, %v3365_v61 }
 0xe3f   : > { %v3603_v18 = vpop.permute.xlu0 %3602 }
 0xe40   : > { %5138 = vpow2.f32 %v3366_v62 }
 0xe4a   : > { %v5139_v63 = vpop.eup %5138 }
 0xe4b   : > { %v3368_v0 = vsel %vm1799_vm6, %v5139_v63, 0.0 }
 0xe4c   : > { %3369 = vadd.xlane.f32.xlu1 %v3368_v0 }
 0xe5d   : > { %5066 = vrot.lane.b32.xlu1 %v6076_v34, %s5410_s19 }
 0xe61   : > { %5071 = vrot.lane.b32.xlu1 %v6067_v25, %s5413_s4 }
 0xe65   : > { %5076 = vrot.lane.b32.xlu1 %v6067_v25, %s5417_s12 }
 0xe69   : > { %3850 = vrot.lane.b32.xlu1 %v3115_v27, %s5417_s12 }
 0xe78   : > { %v3598_v1 = vpop.f32.mrb[22].mxu0 }
 0xe79   : > { %v4731_v4 = vpop.f32.mrb[23].mxu0 }
 0xed9   : > { %v3370_v5 = vpop.xlane.xlu1 %3369 }
 0xeda   : > { %5140 = vrcp.f32 %v3370_v5  ;;  %v4380_v5 = vld [vmem:[#allocation11] ss:$0 sm:$0xff] }
 0xedd   : > { %v5067_v6 = vpop.permute.xlu1 %5066 }
 0xede   : > { %v5069_v7 = vunpack.i.h.bf16 %v5067_v6  ;;  %v5068_v8 = vunpack.i.l.bf16 %v5067_v6 }
 0xee0   : > { %v4880_v9 = vpack.c.bf16 %v5069_v7, %v5068_v8 }
 0xee1   : > { %v5072_v14 = vpop.permute.xlu1 %5071 }
 0xee2   : > { %4881 = vmatpush3.bf16.msra.mxu1 %v4880_v9  ;;  %v5074_v39 = vunpack.i.h.bf16 %v5072_v14  ;;  %v5073_v20 = vunpack.i.l.bf16 %v5072_v14 }
 0xee3   : > { %4722 = vmatprep.subr.mxu1 %v5406_v12 }
 0xee4   : > { %v5141_v10 = vpop.eup %5140  ;;  %v4883_v2 = vpack.c.bf16 %v5074_v39, %v5073_v20 }
 0xee5   : > { %v3372_v11 = vmul.f32 %v5141_v10, %v5139_v63  ;;  %v5077_v15 = vpop.permute.xlu1 %5076 }
 0xee6   : > { %v5079_v22 = vunpack.i.h.bf16 %v5077_v15  ;;  %v5078_v17 = vunpack.i.l.bf16 %v5077_v15 }
 0xee7   : > { %4720 = vmatmul.mubr.msk.f32.vlgmr.msra.gmra.mrb[22].mxu1 %vm1799_vm6, %v3372_v11 }
 0xee8   : > { %4723 = vmatpush3.msra.mxu1 %v4365_v13  ;;  %4724 = vmatprep.mubr.msk.f32.mxu1 %vm5407_vm3, %v5406_v12  ;;  %v4890_v19 = vpack.c.bf16 %v5079_v22, %v5078_v17 }
 0xee9   : > { %4882 = vmatprep.subr.bf16.mxu1 %v5408_v38  ;;  %v3851_v21 = vpop.permute.xlu1 %3850 }
 0xfba   : > { %v3450_v3 = vpop.f32.mrb[22].mxu1 }
 0xfbb   : > { %v4721_v16 = vpop.f32.mrb[23].mxu1  ;;  %4725 = vmatmul.mubr.msk.f32.vlgmr.msra.gmra.mrb[24].mxu1 %vm1713_vm4, %v3450_v3 }
 0xfbc   : > { %4885 = vmatpush3.bf16.xpose.msk.msra.mxu1 %vm5936_vm5, %v4883_v2  ;;  %4736 = vmatprep.mubr.msk.f32.mxu1 %vm5407_vm3, %v5406_v12 }
 0xfbd   : > { %4889 = vmatprep.subr.bf16.mxu1 %v5408_v38 }
 0xfc3   : > { %4737 = vmatmul.mubr.msk.f32.vlgmr.msra.gmra.mrb[26].mxu1 %vm1713_vm4, %v3603_v18 }
 0xfc4   : > { %4892 = vmatpush3.bf16.xpose.msk.msra.mxu1 %vm5936_vm5, %v4890_v19  ;;  %4755 = vmatprep.mubr.msk.f32.mxu1 %vm5407_vm3, %v5406_v12 }
 0xfcb   : > { %4756 = vmatmul.mubr.msk.f32.vlgmr.msra.gmra.mrb[28].mxu1 %vm1713_vm4, %v3851_v21 }
0x108e   : > { %v3525_v23 = vpop.f32.mrb[24].mxu1 }
0x108f   : > { %v3599_v24 = vadd.f32 %v3598_v1, %v3525_v23  ;;  %v4726_v25 = vpop.f32.mrb[25].mxu1 }
0x1096   : > { %v3680_v26 = vpop.f32.mrb[26].mxu1 }
0x1097   : > { %v4738_v27 = vpop.f32.mrb[27].mxu1  ;;  %v3684_v28 = vsel %vm1799_vm6, %v3680_v26, -inf }
0x1098   : > { %3685 = vmax.xlane.f32.xlu1 %v3684_v28 }
0x109e   : > { %v3928_v29 = vpop.f32.mrb[28].mxu1 }
0x109f   : > { %v4757_v30 = vpop.f32.mrb[29].mxu1  ;;  %v3932_v43 = vsel %vm1799_vm6, %v3928_v29, -inf }
0x10a9   : > { %5081 = vrot.lane.b32.xlu1 %v6076_v34, %s5413_s4  ;;  %s6163_s4 = scalar_lea.hbm %s6309_s0, %s4381_s30 }
0x1125   : > { %v3686_v44 = vpop.xlane.xlu1 %3685 }
0x1126   : > { %v3687_v31 = vsub.f32 %v3680_v26, %v3686_v44 }
0x1128   : > { %v3688_v32 = vmul.f32 1.442695, %v3687_v31 }
0x1129   : > { %v5082_v33 = vpop.permute.xlu1 %5081 }
0x112a   : > { %5142 = vpow2.f32 %v3688_v32  ;;  %v5084_v36 = vunpack.i.h.bf16 %v5082_v33  ;;  %v5083_v37 = vunpack.i.l.bf16 %v5082_v33 }
0x112c   : > { %v4887_v40 = vpack.c.bf16 %v5084_v36, %v5083_v37 }
0x112e   : > { %4888 = vmatpush3.bf16.msra.mxu0 %v4887_v40 }
0x112f   : > { %4746 = vmatprep.subr.mxu0 %v5406_v12 }
0x1134   : > { %v5143_v41 = vpop.eup %5142 }
0x1135   : > { %v3690_v42 = vsel %vm1799_vm6, %v5143_v41, 0.0 }
0x1136   : > { %3691 = vadd.xlane.f32.xlu0 %v3690_v42 }
0x113a   : > { %3933 = vmax.xlane.f32.xlu0 %v3932_v43 }
0x11c3   : > { %v3692_v45 = vpop.xlane.xlu0 %3691 }
0x11c4   : > { %5144 = vrcp.f32 %v3692_v45 }
0x11c7   : > { %v3934_v35 = vpop.xlane.xlu0 %3933 }
0x11c8   : > { %v3935_v46 = vsub.f32 %v3928_v29, %v3934_v35 }
0x11ca   : > { %v3936_v47 = vmul.f32 1.442695, %v3935_v46 }
0x11cc   : > { %5146 = vpow2.f32 %v3936_v47 }
0x11ce   : > { %v5145_v48 = vpop.eup %5144 }
0x11cf   : > { %v3694_v49 = vmul.f32 %v5145_v48, %v5143_v41 }
0x11d1   : > { %4744 = vmatmul.mubr.msk.f32.vlgmr.msra.gmra.mrb[24].mxu0 %vm1799_vm6, %v3694_v49 }
0x11d2   : > { %4748 = vmatprep.mubr.msk.f32.mxu0 %vm5407_vm3, %v5406_v12  ;;  %4747 = vmatpush3.msra.mxu0 %v4372_v52 }
0x11d3   : > { %4893 = vmatprep.subr.bf16.mxu0 %v5408_v38  ;;  %v4378_v38 = vld [vmem:[%s6306_s1 + $0x18] sm:$0xff] }
0x11d6   : > { %v5147_v50 = vpop.eup %5146 }
0x11d7   : > { %v3938_v51 = vsel %vm1799_vm6, %v5147_v50, 0.0 }
0x11d8   : > { %3939 = vadd.xlane.f32.xlu0 %v3938_v51 }
0x11ee   : > { %5086 = vrot.lane.b32.xlu0 %v6076_v34, %s5417_s12  ;;  %s5318_s12 = scalar_lea.vmem %s6165_s28, 16 }
0x11ef   : > { %p5319_p13 = scmp.ne.s32.totalorder %s6165_s28, %s5318_s12  ;;  %p5326_p10 = scmp.lt.s32.totalorder %s5324_s2, %s5318_s12 }
0x11f1   : > { %p5320_p6 = pnand %p5319_p13, %p6310_p1  ;;  %p5327_p0 = por %p5326_p10, %p5325_p5 }
0x11f3   : > { %p5321_p9 = pneg %p5320_p6 }
0x11f5   : > { %p5328_p2 = pnand %p5327_p0, %p5321_p9 }
0x1265   : > { %v3940_v53 = vpop.xlane.xlu0 %3939 }
0x1266   : > { %5148 = vrcp.f32 %v3940_v53 }
0x1269   : > { %v5087_v54 = vpop.permute.xlu0 %5086 }
0x126a   : > { %v5089_v55 = vunpack.i.h.bf16 %v5087_v54  ;;  %v5088_v56 = vunpack.i.l.bf16 %v5087_v54 }
0x126c   : > { %v4894_v58 = vpack.c.bf16 %v5089_v55, %v5088_v56 }
0x1270   : > { %v5149_v57 = vpop.eup %5148 }
0x1271   : > { %v3942_v34 = vmul.f32 %v5149_v57, %v5147_v50 }
0x12a4   : > { %v3770_v59 = vpop.f32.mrb[24].mxu0 }
0x12a5   : > { %v4745_v60 = vpop.f32.mrb[25].mxu0  ;;  %4749 = vmatmul.mubr.msk.f32.vlgmr.msra.gmra.mrb[26].mxu0 %vm1713_vm4, %v3770_v59 }
0x12a6   : > { %4895 = vmatpush3.bf16.msra.mxu0 %v4894_v58  ;;  %4762 = vmatprep.mubr.msk.f32.mxu0 %vm5407_vm3, %v5406_v12 }
0x12a7   : > { %4765 = vmatprep.subr.mxu0 %v5406_v12 }
0x12a9   : > { %4763 = vmatmul.mubr.msk.f32.vlgmr.msra.gmra.mrb[28].mxu0 %vm1799_vm6, %v3942_v34 }
0x12aa   : > { %4767 = vmatprep.mubr.msk.f32.mxu0 %vm5407_vm3, %v5406_v12  ;;  %4766 = vmatpush3.msra.mxu0 %v4378_v38 }
0x1378   : > { %v3845_v61 = vpop.f32.mrb[26].mxu0 }
0x1379   : > { %v3849_v62 = vadd.f32 %v3845_v61, %v3599_v24  ;;  %v4750_v63 = vpop.f32.mrb[27].mxu0 }
0x137c   : > { %v4018_v0 = vpop.f32.mrb[28].mxu0 }
0x137d   : > { %v4764_v1 = vpop.f32.mrb[29].mxu0  ;;  %4768 = vmatmul.mubr.msk.f32.vlgmr.msra.gmra.mrb[30].mxu0 %vm1713_vm4, %v4018_v0 }
0x1450   : > { %v4093_v4 = vpop.f32.mrb[30].mxu0 }
0x1451   : > { %v4097_v6 = vadd.f32 %v4093_v4, %v3849_v62  ;;  %v4769_v7 = vpop.f32.mrb[31].mxu0 }
0x1453   : > { %v4105_v8 = vadd.f32 %v4380_v5, %v4097_v6 }
0x1455   : > { %v4106_v12 = vsel %vm1167_vm2, %v4105_v8, 0.0 }
0x1456   : > { %v4107_v9 = vrot.slane %v4106_v12, 4 }
0x1458   : > { %v4108_v10 = vadd.f32 %v4107_v9, %v4106_v12 }
0x145a   : > { %v4109_v11 = vrot.slane %v4108_v10, 2 }
0x145c   : > { %v4110_v13 = vadd.f32 %v4109_v11, %v4108_v10 }
0x145e   : > { %v4111_v14 = vrot.slane %v4110_v13, 1 }
0x1460   : > { %v4112_v39 = vadd.f32 %v4111_v14, %v4110_v13 }
0x1462   : > { %v4114_v20 = vmul.f32 0.125, %v4112_v39 }
0x1464   : > { %4116 = vst.msk [vmem:[%s945_s10] sm:$0x1] %vm4115_vm7, %v4114_v20 }
0x1465   : > { %5331 = shalt.err (!%p5328_p2)
}
0x1466   : > { %s5332_s11 = scalar_lea.hbm %s6163_s4, 16  ;;  %s5336_s5 = scalar_lea.hbm %s6309_s0, 32 }
0x1467   : > { %p5333_p3 = scmp.ne.s32.totalorder %s6163_s4, %s5332_s11  ;;  %p5337_p7 = scmp.lt.u32.totalorder %s6163_s4, %s6309_s0 }
0x1468   : > { %p5338_p8 = scmp.lt.u32.totalorder %s5336_s5, %s5332_s11  ;;  %p5340_p13 = scmp.lt.u32.totalorder %s5332_s11, %s6163_s4 }
0x1469   : > { %p5334_p4 = pnand %p5333_p3, %p6310_p1 }
0x146a   : > { %p5339_p11 = por %p5338_p8, %p5337_p7 }
0x146b   : > { %p5335_p12 = pneg %p5334_p4 }
0x146c   : > { %p5341_p6 = por %p5340_p13, %p5339_p11 }
0x146e   : > { %p5342_p9 = pnand %p5341_p6, %p5335_p12 }
0x1470   : > { %5345 = shalt.err (!%p5342_p9)
}
0x1471   : > { %4928 = dma.vmem_to_hbm [thread:$0]  (%p6310_p1), %s6165_s28, 16, %s6163_s4, %s4118_s29  }
0x1472 PF: > { %s6311_s12 = sld [smem:[#allocation22_spill]]  ;;  %s6312_s8 = sld [smem:[#allocation19_spill]] }
0x1473   : > { %s6313_s2 = sld [smem:[#allocation26_spill]] }
0x1478   : > { %p4965_p5 = scmp.ge.s32.totalorder %s6311_s12, 2  ;;  %s4142_s30 = sand.u32 1, %s6312_s8  }
0x1479   : > { %p6314_p10 = scmp.ne.s32.totalorder %s6313_s2, 0  ;;  %s4143_s10 = scalar_lea.sflag [#allocation4], %s4142_s30 }
0x147b   : > { %p4950_p0 = pnand %p4965_p5, %p6314_p10 }
0x147d   : > { %5379 = dma.done.wait (!%p4950_p0), %s4143_s10, 16  }
0x147e   : > { %5381 = vsyncadd (!%p4950_p0), %s4143_s10, 4294967280  ;;  %s6315_s30 = sld [smem:[#allocation23_spill]]  ;;  %s6316_s8 = sld [smem:[#allocation20_spill]] }
0x147f   : > { %s6317_s5 = sld [smem:[#allocation21_spill]]  ;;  %s6318_s9 = sld [smem:[#allocation24_spill]] }
0x1484   : > { %p42_p2 = scmp.ge.s32.totalorder %s6315_s30, 4  }
0x1486   :  { %44 = sbr.rel (!%p42_p2) target bundleno = 24 (0x18), region = 204 }
0x148d   :  { %4147 = vsyncpa [#allocation3], 1 }
0x148e   :  { %4149 = vsyncpa [#allocation3 + $0x1], 1 }
0x148f   :  { %4150 = vsyncpa [#allocation6], 1 }
0x1490   :  { %4151 = vsyncpa [#allocation9], 1 }
0x1491   :  { %4152 = vsyncpa [#allocation12], 1 }
0x1492   :  { %4153 = vsyncpa [#allocation4], 1 }
0x1493   :  { %4155 = vsyncpa [#allocation4 + $0x1], 1 }

</bundles_post_ra>
